<compile_context>
chip_gen: v7x
topology: tpu7x:2x2x1
jax: 0.10.0
libtpu: 0.0.40
codegen_flags: <defaults>
</compile_context>

<pallas_src>
import functools
import math

import jax
import jax.numpy as jnp
from jax.experimental import pallas as pl
from jax.experimental.pallas import tpu as pltpu


# ----------------------------------------------------------------------------
# Small helpers: padding / tiling / VMEM sizing
# ----------------------------------------------------------------------------
def _round_up(x, m):
    return ((x + m - 1) // m) * m


def _pad_cols_per_gate(w, H, Hp):
    """(D, 3H) -> (D, 3*Hp): each gate's H columns land at the start of its Hp slot."""
    D = w.shape[0]
    w3 = w.reshape(D, 3, H)
    w3 = jnp.pad(w3, ((0, 0), (0, 0), (0, Hp - H)))
    return w3.reshape(D, 3 * Hp)


def _pad_rows(w, Dp):
    return jnp.pad(w, ((0, Dp - w.shape[0]), (0, 0)))


def _pad_vec(b, Hp):
    return jnp.pad(b, (0, Hp - b.shape[0])).reshape(1, Hp)


def _pick_batch_tile(B, per_item_bytes, budget=8 << 20):
    """Largest divisor of B with grid >= 2 (v7x megacore) that fits the budget."""
    if B <= 1:
        return 1
    best = 1
    for tb in range(1, B // 2 + 1):
        if B % tb == 0 and tb * per_item_bytes <= budget:
            best = tb
    return best


def _vmem_limit(block_bytes):
    # double-buffered streamed blocks + temporary headroom; clamp so the request
    # stays comfortably inside v7x's 64 MiB physical VMEM.
    return int(min(max(2 * block_bytes + (16 << 20), 32 << 20), 48 << 20))


# ----------------------------------------------------------------------------
# GNN kernel: SR-GNN gated propagation, all `step` iterations fused (static
# unroll), shared-weight matmuls over the flattened (tb*S, Hp) activation,
# adjacency contraction on the VPU (S is small).
# ----------------------------------------------------------------------------
def gnn_kernel(a_in_ref, a_out_ref, h0_ref,
               wein_ref, bein_ref, weout_ref, beout_ref,
               biah_ref, boah_ref, wih_in_ref, wih_out_ref, bih_ref,
               whh_ref, bhh_ref, out_ref, *, step):
    TB, S, H = h0_ref.shape  # H == padded Hp (multiple of 128), S padded to 8k

    a_in = a_in_ref[...]        # (TB, S, S) f32
    a_out = a_out_ref[...]      # (TB, S, S) f32
    wein = wein_ref[...]        # (H, H)   bf16
    weout = weout_ref[...]      # (H, H)   bf16
    bein = bein_ref[...]        # (1, H)   f32
    beout = beout_ref[...]      # (1, H)   f32
    biah = biah_ref[...]        # (1, H)   f32
    boah = boah_ref[...]        # (1, H)   f32
    wih_in = wih_in_ref[...]    # (H, 3H)  bf16
    wih_out = wih_out_ref[...]  # (H, 3H)  bf16
    bih = bih_ref[...]          # (1, 3H)  f32
    whh = whh_ref[...]          # (H, 3H)  bf16
    bhh = bhh_ref[...]          # (1, 3H)  f32

    def one_step(h_flat):       # h_flat: (TB*S, H) f32
        h_bf = h_flat.astype(jnp.bfloat16)
        # shared-weight edge projections, one lane-dense MXU call each
        ein = jnp.dot(h_bf, wein, preferred_element_type=jnp.float32) + bein
        eout = jnp.dot(h_bf, weout, preferred_element_type=jnp.float32) + beout
        ein3 = ein.reshape(TB, S, H)
        eout3 = eout.reshape(TB, S, H)

        # per-graph adjacency contraction: msg[b,i,:] = sum_j A[b,i,j] * e[b,j,:]
        if S <= 32:
            # VPU broadcast-MAC over the tiny S axis (keeps the MXU free)
            msg_in = jnp.zeros((TB, S, H), jnp.float32)
            msg_out = jnp.zeros((TB, S, H), jnp.float32)
            for j in range(S):
                msg_in = msg_in + a_in[:, :, j:j + 1] * ein3[:, j:j + 1, :]
                msg_out = msg_out + a_out[:, :, j:j + 1] * eout3[:, j:j + 1, :]
        else:
            msg_in = jnp.einsum('bij,bjh->bih', a_in, ein3,
                                preferred_element_type=jnp.float32)
            msg_out = jnp.einsum('bij,bjh->bih', a_out, eout3,
                                 preferred_element_type=jnp.float32)
        msg_in = msg_in.reshape(TB * S, H) + biah
        msg_out = msg_out.reshape(TB * S, H) + boah

        # gate projections: the concat is replaced by split-weight matmuls summed
        gi = (jnp.dot(msg_in.astype(jnp.bfloat16), wih_in,
                      preferred_element_type=jnp.float32)
              + jnp.dot(msg_out.astype(jnp.bfloat16), wih_out,
                        preferred_element_type=jnp.float32)
              + bih)
        gh = jnp.dot(h_bf, whh, preferred_element_type=jnp.float32) + bhh

        i_r, i_i, i_n = gi[:, :H], gi[:, H:2 * H], gi[:, 2 * H:]
        h_r, h_i, h_n = gh[:, :H], gh[:, H:2 * H], gh[:, 2 * H:]
        resetgate = jax.nn.sigmoid(i_r + h_r)
        inputgate = jax.nn.sigmoid(i_i + h_i)
        newgate = jnp.tanh(i_n + resetgate * h_n)
        return newgate + inputgate * (h_flat - newgate)

    h = h0_ref[...].reshape(TB * S, H)
    for _ in range(max(int(step), 0)):      # compile-time unroll; step==0 -> identity
        h = one_step(h)
    out_ref[...] = h.reshape(TB, S, H)


def gnn_pallas(A_in, A_out, h0,
               wein, bein, weout, beout, biah, boah,
               wih_in, wih_out, bih, whh, bhh, *, step=1, batch_tile=None):
    B, Sp, Hp = h0.shape
    per_item = (2 * Sp * Sp + 2 * Sp * Hp) * 4
    tb = batch_tile if batch_tile is not None else _pick_batch_tile(B, per_item)
    assert B % tb == 0
    grid = (B // tb,)
    weight_bytes = (2 * Hp * Hp + 3 * Hp * 3 * Hp) * 2 + 16 * Hp * 4
    vmem_limit = _vmem_limit(tb * per_item + weight_bytes)

    bmap = lambda b: (b, 0, 0)
    wmap = lambda b: (0, 0)

    # NOTE: constant weight blocks could use pipeline_mode=pl.Buffered(1) to
    # halve their VMEM footprint; left at the default for maximum portability.
    kernel = functools.partial(gnn_kernel, step=step)
    return pl.pallas_call(
        kernel,
        out_shape=jax.ShapeDtypeStruct((B, Sp, Hp), jnp.float32),
        grid=grid,
        in_specs=[
            pl.BlockSpec((tb, Sp, Sp), bmap),       # A_in
            pl.BlockSpec((tb, Sp, Sp), bmap),       # A_out
            pl.BlockSpec((tb, Sp, Hp), bmap),       # h0
            pl.BlockSpec((Hp, Hp), wmap), pl.BlockSpec((1, Hp), wmap),        # edge-in
            pl.BlockSpec((Hp, Hp), wmap), pl.BlockSpec((1, Hp), wmap),        # edge-out
            pl.BlockSpec((1, Hp), wmap), pl.BlockSpec((1, Hp), wmap),         # b_iah, b_oah
            pl.BlockSpec((Hp, 3 * Hp), wmap),       # W_ih (in half)
            pl.BlockSpec((Hp, 3 * Hp), wmap),       # W_ih (out half)
            pl.BlockSpec((1, 3 * Hp), wmap),        # b_ih
            pl.BlockSpec((Hp, 3 * Hp), wmap),       # W_hh
            pl.BlockSpec((1, 3 * Hp), wmap),        # b_hh
        ],
        out_specs=pl.BlockSpec((tb, Sp, Hp), bmap),
        compiler_params=pltpu.CompilerParams(
            dimension_semantics=("parallel",),
            vmem_limit_bytes=vmem_limit),
    )(A_in, A_out, h0, wein, bein, weout, beout, biah, boah,
      wih_in, wih_out, bih, whh, bhh)


# ----------------------------------------------------------------------------
# GRU recurrence kernel.  gi (hoisted input projection, batch-major) streams in
# as one (tb, T, 3Hp) block per batch tile; the whole T recurrence runs inside
# the kernel and the (tb, T, Hp) output block is written back once.
# ----------------------------------------------------------------------------
def gru_kernel(gi_ref, whh_ref, bhh_ref, out_ref, h_scr):
    TB, T, H3 = gi_ref.shape
    H = out_ref.shape[2]

    whh = whh_ref[...]          # (Hp, 3Hp) bf16
    bhh = bhh_ref[...]          # (1, 3Hp)  f32

    def cell(h, gi_t):
        gh = jnp.dot(h.astype(jnp.bfloat16), whh,
                     preferred_element_type=jnp.float32) + bhh
        r = jax.nn.sigmoid(gi_t[:, :H] + gh[:, :H])
        z = jax.nn.sigmoid(gi_t[:, H:2 * H] + gh[:, H:2 * H])
        n = jnp.tanh(gi_t[:, 2 * H:] + r * gh[:, 2 * H:])
        return (1.0 - z) * n + z * h

    if T <= 32:
        # static unroll: hidden state carried as a value (scratch unused)
        h = jnp.zeros((TB, H), jnp.float32)
        for t in range(T):
            gi_t = gi_ref[:, t:t + 1, :].reshape(TB, H3)
            h = cell(h, gi_t)
            out_ref[:, t:t + 1, :] = h[:, None, :]
    else:
        h_scr[...] = jnp.zeros_like(h_scr)

        @pl.loop(0, T)
        def _(t):
            gi_t = gi_ref[:, pl.ds(t, 1), :].reshape(TB, H3)
            h_new = cell(h_scr[...], gi_t)
            h_scr[...] = h_new
            out_ref[:, pl.ds(t, 1), :] = h_new[:, None, :]


def gru_pallas(gi, whh, bhh, Hp, *, batch_tile=None):
    """gi: (B, T, 3Hp) batch-major precomputed input projection (f32)."""
    B, T, H3 = gi.shape
    per_item = T * (H3 + Hp) * 4
    tb = batch_tile if batch_tile is not None else _pick_batch_tile(B, per_item)
    assert B % tb == 0
    grid = (B // tb,)
    vmem_limit = _vmem_limit(tb * per_item + Hp * H3 * 2 + H3 * 4)

    return pl.pallas_call(
        gru_kernel,
        out_shape=jax.ShapeDtypeStruct((B, T, Hp), jnp.float32),
        grid=grid,
        in_specs=[
            pl.BlockSpec((tb, T, H3), lambda b: (b, 0, 0)),
            pl.BlockSpec((Hp, H3), lambda b: (0, 0)),
            pl.BlockSpec((1, H3), lambda b: (0, 0)),
        ],
        out_specs=pl.BlockSpec((tb, T, Hp), lambda b: (b, 0, 0)),
        scratch_shapes=[pltpu.VMEM((tb, Hp), jnp.float32)],
        compiler_params=pltpu.CompilerParams(
            dimension_semantics=("parallel",),
            vmem_limit_bytes=vmem_limit),
    )(gi, whh, bhh)


# ----------------------------------------------------------------------------
# Parameters (deterministic init: uniform(-stdv, stdv), stdv = 1/sqrt(2H),
# matching MKM_SR.reset_parameters).
# ----------------------------------------------------------------------------
def init_params(key, n_entity, n_relation, H):
    stdv = 1.0 / math.sqrt(H * 2)
    shapes = {
        "entity_embedding": (n_entity, H),
        "relation_embedding": (n_relation, H),
        # GNN (SR-GNN gated cell)
        "gnn_w_ih": (3 * H, 2 * H),
        "gnn_w_hh": (3 * H, H),
        "gnn_b_ih": (3 * H,),
        "gnn_b_hh": (3 * H,),
        "gnn_b_iah": (H,),
        "gnn_b_oah": (H,),
        "gnn_edge_in_w": (H, H),
        "gnn_edge_in_b": (H,),
        "gnn_edge_out_w": (H, H),
        "gnn_edge_out_b": (H,),
        # nn.GRU (gate order r, z, n)
        "gru_w_ih": (3 * H, H),
        "gru_w_hh": (3 * H, H),
        "gru_b_ih": (3 * H,),
        "gru_b_hh": (3 * H,),
    }
    keys = jax.random.split(key, len(shapes))
    return {
        name: jax.random.uniform(k, shape, jnp.float32, -stdv, stdv)
        for k, (name, shape) in zip(keys, shapes.items())
    }


# ----------------------------------------------------------------------------
# MKM_SR.forward(inputs, A, relation_inputs) -> (entity_hidden, relation_output)
# ----------------------------------------------------------------------------
def mkm_sr_forward(params, inputs, A, relation_inputs, step=1):
    H = params["entity_embedding"].shape[1]
    B, S = inputs.shape
    Hp = _round_up(H, 128)     # lane-dense hidden size
    Sp = _round_up(S, 8)       # sublane-aligned node count

    # ---------------- entity GNN ----------------
    entity_hidden = jnp.take(params["entity_embedding"], inputs, axis=0)   # (B, S, H)
    h0 = jnp.pad(entity_hidden, ((0, 0), (0, Sp - S), (0, Hp - H)))
    A_in = jnp.pad(A[:, :, :S], ((0, 0), (0, Sp - S), (0, Sp - S)))
    A_out = jnp.pad(A[:, :, S:], ((0, 0), (0, Sp - S), (0, Sp - S)))

    wein = jnp.pad(params["gnn_edge_in_w"].T,
                   ((0, Hp - H), (0, Hp - H))).astype(jnp.bfloat16)
    weout = jnp.pad(params["gnn_edge_out_w"].T,
                    ((0, Hp - H), (0, Hp - H))).astype(jnp.bfloat16)
    bein = _pad_vec(params["gnn_edge_in_b"], Hp)
    beout = _pad_vec(params["gnn_edge_out_b"], Hp)
    biah = _pad_vec(params["gnn_b_iah"], Hp)
    boah = _pad_vec(params["gnn_b_oah"], Hp)

    wih_t = params["gnn_w_ih"].T                        # (2H, 3H)
    wih_in = _pad_rows(_pad_cols_per_gate(wih_t[:H], H, Hp), Hp).astype(jnp.bfloat16)
    wih_out = _pad_rows(_pad_cols_per_gate(wih_t[H:], H, Hp), Hp).astype(jnp.bfloat16)
    bih = _pad_cols_per_gate(params["gnn_b_ih"].reshape(1, 3 * H), H, Hp)
    whh_g = _pad_rows(_pad_cols_per_gate(params["gnn_w_hh"].T, H, Hp),
                      Hp).astype(jnp.bfloat16)
    bhh_g = _pad_cols_per_gate(params["gnn_b_hh"].reshape(1, 3 * H), H, Hp)

    ent_out = gnn_pallas(
        A_in, A_out, h0,
        wein, bein, weout, beout, biah, boah,
        wih_in, wih_out, bih, whh_g, bhh_g,
        step=step,
    )
    entity_hidden = ent_out[:, :S, :H]

    # ---------------- relation GRU ----------------
    rel_emb = jnp.take(params["relation_embedding"], relation_inputs, axis=0)  # (B, T, H)
    rel_p = jnp.pad(rel_emb, ((0, 0), (0, 0), (0, Hp - H)))

    gru_wih = _pad_rows(_pad_cols_per_gate(params["gru_w_ih"].T, H, Hp),
                        Hp).astype(jnp.bfloat16)
    gru_bih = _pad_cols_per_gate(params["gru_b_ih"].reshape(1, 3 * H), H, Hp)
    gru_whh = _pad_rows(_pad_cols_per_gate(params["gru_w_hh"].T, H, Hp),
                        Hp).astype(jnp.bfloat16)
    gru_bhh = _pad_cols_per_gate(params["gru_b_hh"].reshape(1, 3 * H), H, Hp)

    # Hoisted input projection for ALL timesteps (one matmul, batch-major).
    gi = jnp.einsum("bth,hk->btk", rel_p.astype(jnp.bfloat16), gru_wih,
                    preferred_element_type=jnp.float32) + gru_bih
    out = gru_pallas(gi, gru_whh, gru_bhh, Hp)          # (B, T, Hp) batch-major
    relation_output = out[:, :, :H]

    return entity_hidden, relation_output


# ----------------------------------------------------------------------------
# Pure-JAX reference (mirrors the PyTorch math) for verification.
# ----------------------------------------------------------------------------
def mkm_sr_reference(params, inputs, A, relation_inputs, step=1):
    H = params["entity_embedding"].shape[1]
    h = jnp.take(params["entity_embedding"], inputs, axis=0)
    S = h.shape[1]
    for _ in range(step):
        ein = h @ params["gnn_edge_in_w"].T + params["gnn_edge_in_b"]
        eout = h @ params["gnn_edge_out_w"].T + params["gnn_edge_out_b"]
        input_in = jnp.matmul(A[:, :, :S], ein) + params["gnn_b_iah"]
        input_out = jnp.matmul(A[:, :, S:], eout) + params["gnn_b_oah"]
        inp = jnp.concatenate([input_in, input_out], axis=2)
        gi = inp @ params["gnn_w_ih"].T + params["gnn_b_ih"]
        gh = h @ params["gnn_w_hh"].T + params["gnn_b_hh"]
        i_r, i_i, i_n = gi[..., :H], gi[..., H:2 * H], gi[..., 2 * H:]
        h_r, h_i, h_n = gh[..., :H], gh[..., H:2 * H], gh[..., 2 * H:]
        rg = jax.nn.sigmoid(i_r + h_r)
        ig = jax.nn.sigmoid(i_i + h_i)
        ng = jnp.tanh(i_n + rg * h_n)
        h = ng + ig * (h - ng)
    entity_hidden = h

    x = jnp.take(params["relation_embedding"], relation_inputs, axis=0)
    B, T, _ = x.shape
    hh = jnp.zeros((B, H), jnp.float32)
    outs = []
    for t in range(T):
        gi = x[:, t] @ params["gru_w_ih"].T + params["gru_b_ih"]
        gh = hh @ params["gru_w_hh"].T + params["gru_b_hh"]
        r = jax.nn.sigmoid(gi[:, :H] + gh[:, :H])
        z = jax.nn.sigmoid(gi[:, H:2 * H] + gh[:, H:2 * H])
        n = jnp.tanh(gi[:, 2 * H:] + r * gh[:, 2 * H:])
        hh = (1.0 - z) * n + z * hh
        outs.append(hh)
    relation_output = jnp.stack(outs, axis=1)
    return entity_hidden, relation_output


if __name__ == "__main__":
    # Small, module-consistent shapes.
    n_entity, n_relation, n_item = 50, 10, 40
    hidden_size = 32
    batch = 2
    n_nodes = 8        # graph nodes per session (S)
    rel_seq = 6        # relation sequence length (T)
    step = 1           # opt.step

    key = jax.random.PRNGKey(0)
    k_in, k_A, k_rel, k_params = jax.random.split(key, 4)

    inputs = jax.random.randint(k_in, (batch, n_nodes), 0, n_entity, dtype=jnp.int32)
    A = jax.random.uniform(k_A, (batch, n_nodes, 2 * n_nodes), jnp.float32)
    relation_inputs = jax.random.randint(k_rel, (batch, rel_seq), 0, n_relation, dtype=jnp.int32)

    params = init_params(k_params, n_entity, n_relation, hidden_size)

    ent_h, rel_out = mkm_sr_forward(params, inputs, A, relation_inputs, step=step)
    ent_h = jax.block_until_ready(ent_h)
    rel_out = jax.block_until_ready(rel_out)

    ref_ent, ref_rel = mkm_sr_reference(params, inputs, A, relation_inputs, step=step)
    assert ent_h.shape == (batch, n_nodes, hidden_size)
    assert rel_out.shape == (batch, rel_seq, hidden_size)
    # bf16 MXU operands (f32 accumulation / gate math) -> slightly looser tolerance.
    assert jnp.allclose(ent_h, ref_ent, atol=1.5e-2, rtol=1.5e-2)
    assert jnp.allclose(rel_out, ref_rel, atol=1.5e-2, rtol=1.5e-2)

    # TODO(synk): predict()/loss/optimizer are not part of forward(); not implemented here.
    print("KERNEL_OK")
</pallas_src>

<mosaic_0001>
module attributes {stable_mosaic.version = 11 : i64} {
  func.func @gnn_kernel(%arg0: i32, %arg1: memref<1x8x8xf32, #tpu.memory_space<vmem>>, %arg2: memref<1x8x8xf32, #tpu.memory_space<vmem>>, %arg3: memref<1x8x128xf32, #tpu.memory_space<vmem>>, %arg4: memref<128x128xbf16, #tpu.memory_space<vmem>>, %arg5: memref<1x128xf32, #tpu.memory_space<vmem>>, %arg6: memref<128x128xbf16, #tpu.memory_space<vmem>>, %arg7: memref<1x128xf32, #tpu.memory_space<vmem>>, %arg8: memref<1x128xf32, #tpu.memory_space<vmem>>, %arg9: memref<1x128xf32, #tpu.memory_space<vmem>>, %arg10: memref<128x384xbf16, #tpu.memory_space<vmem>>, %arg11: memref<128x384xbf16, #tpu.memory_space<vmem>>, %arg12: memref<1x384xf32, #tpu.memory_space<vmem>>, %arg13: memref<128x384xbf16, #tpu.memory_space<vmem>>, %arg14: memref<1x384xf32, #tpu.memory_space<vmem>>, %arg15: memref<1x8x128xf32, #tpu.memory_space<vmem>>) attributes {dimension_semantics = [#tpu.dimension_semantics<parallel>], iteration_bounds = array<i64: 2>, scalar_prefetch = 0 : i64, scratch_operands = 0 : i64, tpu.core_type = #tpu.core_type<tc>, window_params = [{transform_indices = @transform_0, window_bounds = array<i64: 1, 8, 8>}, {transform_indices = @transform_1, window_bounds = array<i64: 1, 8, 8>}, {transform_indices = @transform_2, window_bounds = array<i64: 1, 8, 128>}, {pipeline_mode = #tpu.pipeline_mode<synchronous>, transform_indices = @transform_3, window_bounds = array<i64: 128, 128>}, {pipeline_mode = #tpu.pipeline_mode<synchronous>, transform_indices = @transform_4, window_bounds = array<i64: 1, 128>}, {pipeline_mode = #tpu.pipeline_mode<synchronous>, transform_indices = @transform_5, window_bounds = array<i64: 128, 128>}, {pipeline_mode = #tpu.pipeline_mode<synchronous>, transform_indices = @transform_6, window_bounds = array<i64: 1, 128>}, {pipeline_mode = #tpu.pipeline_mode<synchronous>, transform_indices = @transform_7, window_bounds = array<i64: 1, 128>}, {pipeline_mode = #tpu.pipeline_mode<synchronous>, transform_indices = @transform_8, window_bounds = array<i64: 1, 128>}, {pipeline_mode = #tpu.pipeline_mode<synchronous>, transform_indices = @transform_9, window_bounds = array<i64: 128, 384>}, {pipeline_mode = #tpu.pipeline_mode<synchronous>, transform_indices = @transform_10, window_bounds = array<i64: 128, 384>}, {pipeline_mode = #tpu.pipeline_mode<synchronous>, transform_indices = @transform_11, window_bounds = array<i64: 1, 384>}, {pipeline_mode = #tpu.pipeline_mode<synchronous>, transform_indices = @transform_12, window_bounds = array<i64: 128, 384>}, {pipeline_mode = #tpu.pipeline_mode<synchronous>, transform_indices = @transform_13, window_bounds = array<i64: 1, 384>}, {transform_indices = @transform_14, window_bounds = array<i64: 1, 8, 128>}]} {
    %c0 = arith.constant 0 : index
    %c0_0 = arith.constant 0 : index
    %c0_1 = arith.constant 0 : index
    %0 = vector.load %arg1[%c0, %c0_0, %c0_1] : memref<1x8x8xf32, #tpu.memory_space<vmem>>, vector<1x8x8xf32>
    %c0_2 = arith.constant 0 : index
    %c0_3 = arith.constant 0 : index
    %c0_4 = arith.constant 0 : index
    %1 = vector.load %arg2[%c0_2, %c0_3, %c0_4] : memref<1x8x8xf32, #tpu.memory_space<vmem>>, vector<1x8x8xf32>
    %c0_5 = arith.constant 0 : index
    %c0_6 = arith.constant 0 : index
    %2 = vector.load %arg4[%c0_5, %c0_6] : memref<128x128xbf16, #tpu.memory_space<vmem>>, vector<128x128xbf16>
    %c0_7 = arith.constant 0 : index
    %c0_8 = arith.constant 0 : index
    %3 = vector.load %arg6[%c0_7, %c0_8] : memref<128x128xbf16, #tpu.memory_space<vmem>>, vector<128x128xbf16>
    %c0_9 = arith.constant 0 : index
    %c0_10 = arith.constant 0 : index
    %4 = vector.load %arg5[%c0_9, %c0_10] : memref<1x128xf32, #tpu.memory_space<vmem>>, vector<1x128xf32>
    %c0_11 = arith.constant 0 : index
    %c0_12 = arith.constant 0 : index
    %5 = vector.load %arg7[%c0_11, %c0_12] : memref<1x128xf32, #tpu.memory_space<vmem>>, vector<1x128xf32>
    %c0_13 = arith.constant 0 : index
    %c0_14 = arith.constant 0 : index
    %6 = vector.load %arg8[%c0_13, %c0_14] : memref<1x128xf32, #tpu.memory_space<vmem>>, vector<1x128xf32>
    %c0_15 = arith.constant 0 : index
    %c0_16 = arith.constant 0 : index
    %7 = vector.load %arg9[%c0_15, %c0_16] : memref<1x128xf32, #tpu.memory_space<vmem>>, vector<1x128xf32>
    %c0_17 = arith.constant 0 : index
    %c0_18 = arith.constant 0 : index
    %8 = vector.load %arg10[%c0_17, %c0_18] : memref<128x384xbf16, #tpu.memory_space<vmem>>, vector<128x384xbf16>
    %c0_19 = arith.constant 0 : index
    %c0_20 = arith.constant 0 : index
    %9 = vector.load %arg11[%c0_19, %c0_20] : memref<128x384xbf16, #tpu.memory_space<vmem>>, vector<128x384xbf16>
    %c0_21 = arith.constant 0 : index
    %c0_22 = arith.constant 0 : index
    %10 = vector.load %arg12[%c0_21, %c0_22] : memref<1x384xf32, #tpu.memory_space<vmem>>, vector<1x384xf32>
    %c0_23 = arith.constant 0 : index
    %c0_24 = arith.constant 0 : index
    %11 = vector.load %arg13[%c0_23, %c0_24] : memref<128x384xbf16, #tpu.memory_space<vmem>>, vector<128x384xbf16>
    %c0_25 = arith.constant 0 : index
    %c0_26 = arith.constant 0 : index
    %12 = vector.load %arg14[%c0_25, %c0_26] : memref<1x384xf32, #tpu.memory_space<vmem>>, vector<1x384xf32>
    %c0_27 = arith.constant 0 : index
    %c0_28 = arith.constant 0 : index
    %c0_29 = arith.constant 0 : index
    %13 = vector.load %arg3[%c0_27, %c0_28, %c0_29] : memref<1x8x128xf32, #tpu.memory_space<vmem>>, vector<1x8x128xf32>
    %14 = vector.shape_cast %13 : vector<1x8x128xf32> to vector<8x128xf32>
    %15 = arith.truncf %14 : vector<8x128xf32> to vector<8x128xbf16>
    %cst = arith.constant dense<0.000000e+00> : vector<8x128xf32>
    %16 = tpu.matmul %15, %2, %cst {dimension_numbers = #tpu.dot_dimension_numbers<[1], [0], [0], [1], [0, 0, 1, 1], [], []>} : vector<8x128xbf16>, vector<128x128xbf16>, vector<8x128xf32> -> vector<8x128xf32>
    %17 = vector.broadcast %4 : vector<1x128xf32> to vector<8x128xf32>
    %18 = arith.addf %16, %17 : vector<8x128xf32>
    %cst_30 = arith.constant dense<0.000000e+00> : vector<8x128xf32>
    %19 = tpu.matmul %15, %3, %cst_30 {dimension_numbers = #tpu.dot_dimension_numbers<[1], [0], [0], [1], [0, 0, 1, 1], [], []>} : vector<8x128xbf16>, vector<128x128xbf16>, vector<8x128xf32> -> vector<8x128xf32>
    %20 = vector.broadcast %5 : vector<1x128xf32> to vector<8x128xf32>
    %21 = arith.addf %19, %20 : vector<8x128xf32>
    %22 = vector.shape_cast %18 : vector<8x128xf32> to vector<1x8x128xf32>
    %23 = vector.shape_cast %21 : vector<8x128xf32> to vector<1x8x128xf32>
    %cst_31 = arith.constant 0.000000e+00 : f32
    %24 = vector.broadcast %cst_31 : f32 to vector<1x8x128xf32>
    %cst_32 = arith.constant 0.000000e+00 : f32
    %25 = vector.broadcast %cst_32 : f32 to vector<1x8x128xf32>
    %26 = vector.extract_strided_slice %0 {offsets = [0, 0, 0], sizes = [1, 8, 1], strides = [1, 1, 1]} : vector<1x8x8xf32> to vector<1x8x1xf32>
    %27 = vector.extract_strided_slice %22 {offsets = [0, 0, 0], sizes = [1, 1, 128], strides = [1, 1, 1]} : vector<1x8x128xf32> to vector<1x1x128xf32>
    %28 = vector.broadcast %26 : vector<1x8x1xf32> to vector<1x8x128xf32>
    %29 = vector.broadcast %27 : vector<1x1x128xf32> to vector<1x8x128xf32>
    %30 = arith.mulf %28, %29 : vector<1x8x128xf32>
    %31 = arith.addf %24, %30 : vector<1x8x128xf32>
    %32 = vector.extract_strided_slice %1 {offsets = [0, 0, 0], sizes = [1, 8, 1], strides = [1, 1, 1]} : vector<1x8x8xf32> to vector<1x8x1xf32>
    %33 = vector.extract_strided_slice %23 {offsets = [0, 0, 0], sizes = [1, 1, 128], strides = [1, 1, 1]} : vector<1x8x128xf32> to vector<1x1x128xf32>
    %34 = vector.broadcast %32 : vector<1x8x1xf32> to vector<1x8x128xf32>
    %35 = vector.broadcast %33 : vector<1x1x128xf32> to vector<1x8x128xf32>
    %36 = arith.mulf %34, %35 : vector<1x8x128xf32>
    %37 = arith.addf %25, %36 : vector<1x8x128xf32>
    %38 = vector.extract_strided_slice %0 {offsets = [0, 0, 1], sizes = [1, 8, 1], strides = [1, 1, 1]} : vector<1x8x8xf32> to vector<1x8x1xf32>
    %39 = vector.extract_strided_slice %22 {offsets = [0, 1, 0], sizes = [1, 1, 128], strides = [1, 1, 1]} : vector<1x8x128xf32> to vector<1x1x128xf32>
    %40 = vector.broadcast %38 : vector<1x8x1xf32> to vector<1x8x128xf32>
    %41 = vector.broadcast %39 : vector<1x1x128xf32> to vector<1x8x128xf32>
    %42 = arith.mulf %40, %41 : vector<1x8x128xf32>
    %43 = arith.addf %31, %42 : vector<1x8x128xf32>
    %44 = vector.extract_strided_slice %1 {offsets = [0, 0, 1], sizes = [1, 8, 1], strides = [1, 1, 1]} : vector<1x8x8xf32> to vector<1x8x1xf32>
    %45 = vector.extract_strided_slice %23 {offsets = [0, 1, 0], sizes = [1, 1, 128], strides = [1, 1, 1]} : vector<1x8x128xf32> to vector<1x1x128xf32>
    %46 = vector.broadcast %44 : vector<1x8x1xf32> to vector<1x8x128xf32>
    %47 = vector.broadcast %45 : vector<1x1x128xf32> to vector<1x8x128xf32>
    %48 = arith.mulf %46, %47 : vector<1x8x128xf32>
    %49 = arith.addf %37, %48 : vector<1x8x128xf32>
    %50 = vector.extract_strided_slice %0 {offsets = [0, 0, 2], sizes = [1, 8, 1], strides = [1, 1, 1]} : vector<1x8x8xf32> to vector<1x8x1xf32>
    %51 = vector.extract_strided_slice %22 {offsets = [0, 2, 0], sizes = [1, 1, 128], strides = [1, 1, 1]} : vector<1x8x128xf32> to vector<1x1x128xf32>
    %52 = vector.broadcast %50 : vector<1x8x1xf32> to vector<1x8x128xf32>
    %53 = vector.broadcast %51 : vector<1x1x128xf32> to vector<1x8x128xf32>
    %54 = arith.mulf %52, %53 : vector<1x8x128xf32>
    %55 = arith.addf %43, %54 : vector<1x8x128xf32>
    %56 = vector.extract_strided_slice %1 {offsets = [0, 0, 2], sizes = [1, 8, 1], strides = [1, 1, 1]} : vector<1x8x8xf32> to vector<1x8x1xf32>
    %57 = vector.extract_strided_slice %23 {offsets = [0, 2, 0], sizes = [1, 1, 128], strides = [1, 1, 1]} : vector<1x8x128xf32> to vector<1x1x128xf32>
    %58 = vector.broadcast %56 : vector<1x8x1xf32> to vector<1x8x128xf32>
    %59 = vector.broadcast %57 : vector<1x1x128xf32> to vector<1x8x128xf32>
    %60 = arith.mulf %58, %59 : vector<1x8x128xf32>
    %61 = arith.addf %49, %60 : vector<1x8x128xf32>
    %62 = vector.extract_strided_slice %0 {offsets = [0, 0, 3], sizes = [1, 8, 1], strides = [1, 1, 1]} : vector<1x8x8xf32> to vector<1x8x1xf32>
    %63 = vector.extract_strided_slice %22 {offsets = [0, 3, 0], sizes = [1, 1, 128], strides = [1, 1, 1]} : vector<1x8x128xf32> to vector<1x1x128xf32>
    %64 = vector.broadcast %62 : vector<1x8x1xf32> to vector<1x8x128xf32>
    %65 = vector.broadcast %63 : vector<1x1x128xf32> to vector<1x8x128xf32>
    %66 = arith.mulf %64, %65 : vector<1x8x128xf32>
    %67 = arith.addf %55, %66 : vector<1x8x128xf32>
    %68 = vector.extract_strided_slice %1 {offsets = [0, 0, 3], sizes = [1, 8, 1], strides = [1, 1, 1]} : vector<1x8x8xf32> to vector<1x8x1xf32>
    %69 = vector.extract_strided_slice %23 {offsets = [0, 3, 0], sizes = [1, 1, 128], strides = [1, 1, 1]} : vector<1x8x128xf32> to vector<1x1x128xf32>
    %70 = vector.broadcast %68 : vector<1x8x1xf32> to vector<1x8x128xf32>
    %71 = vector.broadcast %69 : vector<1x1x128xf32> to vector<1x8x128xf32>
    %72 = arith.mulf %70, %71 : vector<1x8x128xf32>
    %73 = arith.addf %61, %72 : vector<1x8x128xf32>
    %74 = vector.extract_strided_slice %0 {offsets = [0, 0, 4], sizes = [1, 8, 1], strides = [1, 1, 1]} : vector<1x8x8xf32> to vector<1x8x1xf32>
    %75 = vector.extract_strided_slice %22 {offsets = [0, 4, 0], sizes = [1, 1, 128], strides = [1, 1, 1]} : vector<1x8x128xf32> to vector<1x1x128xf32>
    %76 = vector.broadcast %74 : vector<1x8x1xf32> to vector<1x8x128xf32>
    %77 = vector.broadcast %75 : vector<1x1x128xf32> to vector<1x8x128xf32>
    %78 = arith.mulf %76, %77 : vector<1x8x128xf32>
    %79 = arith.addf %67, %78 : vector<1x8x128xf32>
    %80 = vector.extract_strided_slice %1 {offsets = [0, 0, 4], sizes = [1, 8, 1], strides = [1, 1, 1]} : vector<1x8x8xf32> to vector<1x8x1xf32>
    %81 = vector.extract_strided_slice %23 {offsets = [0, 4, 0], sizes = [1, 1, 128], strides = [1, 1, 1]} : vector<1x8x128xf32> to vector<1x1x128xf32>
    %82 = vector.broadcast %80 : vector<1x8x1xf32> to vector<1x8x128xf32>
    %83 = vector.broadcast %81 : vector<1x1x128xf32> to vector<1x8x128xf32>
    %84 = arith.mulf %82, %83 : vector<1x8x128xf32>
    %85 = arith.addf %73, %84 : vector<1x8x128xf32>
    %86 = vector.extract_strided_slice %0 {offsets = [0, 0, 5], sizes = [1, 8, 1], strides = [1, 1, 1]} : vector<1x8x8xf32> to vector<1x8x1xf32>
    %87 = vector.extract_strided_slice %22 {offsets = [0, 5, 0], sizes = [1, 1, 128], strides = [1, 1, 1]} : vector<1x8x128xf32> to vector<1x1x128xf32>
    %88 = vector.broadcast %86 : vector<1x8x1xf32> to vector<1x8x128xf32>
    %89 = vector.broadcast %87 : vector<1x1x128xf32> to vector<1x8x128xf32>
    %90 = arith.mulf %88, %89 : vector<1x8x128xf32>
    %91 = arith.addf %79, %90 : vector<1x8x128xf32>
    %92 = vector.extract_strided_slice %1 {offsets = [0, 0, 5], sizes = [1, 8, 1], strides = [1, 1, 1]} : vector<1x8x8xf32> to vector<1x8x1xf32>
    %93 = vector.extract_strided_slice %23 {offsets = [0, 5, 0], sizes = [1, 1, 128], strides = [1, 1, 1]} : vector<1x8x128xf32> to vector<1x1x128xf32>
    %94 = vector.broadcast %92 : vector<1x8x1xf32> to vector<1x8x128xf32>
    %95 = vector.broadcast %93 : vector<1x1x128xf32> to vector<1x8x128xf32>
    %96 = arith.mulf %94, %95 : vector<1x8x128xf32>
    %97 = arith.addf %85, %96 : vector<1x8x128xf32>
    %98 = vector.extract_strided_slice %0 {offsets = [0, 0, 6], sizes = [1, 8, 1], strides = [1, 1, 1]} : vector<1x8x8xf32> to vector<1x8x1xf32>
    %99 = vector.extract_strided_slice %22 {offsets = [0, 6, 0], sizes = [1, 1, 128], strides = [1, 1, 1]} : vector<1x8x128xf32> to vector<1x1x128xf32>
    %100 = vector.broadcast %98 : vector<1x8x1xf32> to vector<1x8x128xf32>
    %101 = vector.broadcast %99 : vector<1x1x128xf32> to vector<1x8x128xf32>
    %102 = arith.mulf %100, %101 : vector<1x8x128xf32>
    %103 = arith.addf %91, %102 : vector<1x8x128xf32>
    %104 = vector.extract_strided_slice %1 {offsets = [0, 0, 6], sizes = [1, 8, 1], strides = [1, 1, 1]} : vector<1x8x8xf32> to vector<1x8x1xf32>
    %105 = vector.extract_strided_slice %23 {offsets = [0, 6, 0], sizes = [1, 1, 128], strides = [1, 1, 1]} : vector<1x8x128xf32> to vector<1x1x128xf32>
    %106 = vector.broadcast %104 : vector<1x8x1xf32> to vector<1x8x128xf32>
    %107 = vector.broadcast %105 : vector<1x1x128xf32> to vector<1x8x128xf32>
    %108 = arith.mulf %106, %107 : vector<1x8x128xf32>
    %109 = arith.addf %97, %108 : vector<1x8x128xf32>
    %110 = vector.extract_strided_slice %0 {offsets = [0, 0, 7], sizes = [1, 8, 1], strides = [1, 1, 1]} : vector<1x8x8xf32> to vector<1x8x1xf32>
    %111 = vector.extract_strided_slice %22 {offsets = [0, 7, 0], sizes = [1, 1, 128], strides = [1, 1, 1]} : vector<1x8x128xf32> to vector<1x1x128xf32>
    %112 = vector.broadcast %110 : vector<1x8x1xf32> to vector<1x8x128xf32>
    %113 = vector.broadcast %111 : vector<1x1x128xf32> to vector<1x8x128xf32>
    %114 = arith.mulf %112, %113 : vector<1x8x128xf32>
    %115 = arith.addf %103, %114 : vector<1x8x128xf32>
    %116 = vector.extract_strided_slice %1 {offsets = [0, 0, 7], sizes = [1, 8, 1], strides = [1, 1, 1]} : vector<1x8x8xf32> to vector<1x8x1xf32>
    %117 = vector.extract_strided_slice %23 {offsets = [0, 7, 0], sizes = [1, 1, 128], strides = [1, 1, 1]} : vector<1x8x128xf32> to vector<1x1x128xf32>
    %118 = vector.broadcast %116 : vector<1x8x1xf32> to vector<1x8x128xf32>
    %119 = vector.broadcast %117 : vector<1x1x128xf32> to vector<1x8x128xf32>
    %120 = arith.mulf %118, %119 : vector<1x8x128xf32>
    %121 = arith.addf %109, %120 : vector<1x8x128xf32>
    %122 = vector.shape_cast %115 : vector<1x8x128xf32> to vector<8x128xf32>
    %123 = vector.broadcast %6 : vector<1x128xf32> to vector<8x128xf32>
    %124 = arith.addf %122, %123 : vector<8x128xf32>
    %125 = vector.shape_cast %121 : vector<1x8x128xf32> to vector<8x128xf32>
    %126 = vector.broadcast %7 : vector<1x128xf32> to vector<8x128xf32>
    %127 = arith.addf %125, %126 : vector<8x128xf32>
    %128 = arith.truncf %124 : vector<8x128xf32> to vector<8x128xbf16>
    %cst_33 = arith.constant dense<0.000000e+00> : vector<8x384xf32>
    %129 = tpu.matmul %128, %8, %cst_33 {dimension_numbers = #tpu.dot_dimension_numbers<[1], [0], [0], [1], [0, 0, 1, 1], [], []>} : vector<8x128xbf16>, vector<128x384xbf16>, vector<8x384xf32> -> vector<8x384xf32>
    %130 = arith.truncf %127 : vector<8x128xf32> to vector<8x128xbf16>
    %cst_34 = arith.constant dense<0.000000e+00> : vector<8x384xf32>
    %131 = tpu.matmul %130, %9, %cst_34 {dimension_numbers = #tpu.dot_dimension_numbers<[1], [0], [0], [1], [0, 0, 1, 1], [], []>} : vector<8x128xbf16>, vector<128x384xbf16>, vector<8x384xf32> -> vector<8x384xf32>
    %132 = arith.addf %129, %131 : vector<8x384xf32>
    %133 = vector.broadcast %10 : vector<1x384xf32> to vector<8x384xf32>
    %134 = arith.addf %132, %133 : vector<8x384xf32>
    %cst_35 = arith.constant dense<0.000000e+00> : vector<8x384xf32>
    %135 = tpu.matmul %15, %11, %cst_35 {dimension_numbers = #tpu.dot_dimension_numbers<[1], [0], [0], [1], [0, 0, 1, 1], [], []>} : vector<8x128xbf16>, vector<128x384xbf16>, vector<8x384xf32> -> vector<8x384xf32>
    %136 = vector.broadcast %12 : vector<1x384xf32> to vector<8x384xf32>
    %137 = arith.addf %135, %136 : vector<8x384xf32>
    %138 = vector.extract_strided_slice %134 {offsets = [0, 0], sizes = [8, 128], strides = [1, 1]} : vector<8x384xf32> to vector<8x128xf32>
    %139 = vector.extract_strided_slice %134 {offsets = [0, 128], sizes = [8, 128], strides = [1, 1]} : vector<8x384xf32> to vector<8x128xf32>
    %140 = vector.extract_strided_slice %134 {offsets = [0, 256], sizes = [8, 128], strides = [1, 1]} : vector<8x384xf32> to vector<8x128xf32>
    %141 = vector.extract_strided_slice %137 {offsets = [0, 0], sizes = [8, 128], strides = [1, 1]} : vector<8x384xf32> to vector<8x128xf32>
    %142 = vector.extract_strided_slice %137 {offsets = [0, 128], sizes = [8, 128], strides = [1, 1]} : vector<8x384xf32> to vector<8x128xf32>
    %143 = vector.extract_strided_slice %137 {offsets = [0, 256], sizes = [8, 128], strides = [1, 1]} : vector<8x384xf32> to vector<8x128xf32>
    %144 = arith.addf %138, %141 : vector<8x128xf32>
    %145 = arith.negf %144 : vector<8x128xf32>
    %146 = math.exp %145 : vector<8x128xf32>
    %cst_36 = arith.constant 1.000000e+00 : f32
    %147 = vector.broadcast %cst_36 : f32 to vector<8x128xf32>
    %148 = arith.addf %147, %146 : vector<8x128xf32>
    %149 = arith.divf %147, %148 : vector<8x128xf32>
    %150 = arith.addf %139, %142 : vector<8x128xf32>
    %151 = arith.negf %150 : vector<8x128xf32>
    %152 = math.exp %151 : vector<8x128xf32>
    %cst_37 = arith.constant 1.000000e+00 : f32
    %153 = vector.broadcast %cst_37 : f32 to vector<8x128xf32>
    %154 = arith.addf %153, %152 : vector<8x128xf32>
    %155 = arith.divf %153, %154 : vector<8x128xf32>
    %156 = arith.mulf %149, %143 : vector<8x128xf32>
    %157 = arith.addf %140, %156 : vector<8x128xf32>
    %158 = math.tanh %157 : vector<8x128xf32>
    %159 = arith.subf %14, %158 : vector<8x128xf32>
    %160 = arith.mulf %155, %159 : vector<8x128xf32>
    %161 = arith.addf %158, %160 : vector<8x128xf32>
    %162 = vector.shape_cast %161 : vector<8x128xf32> to vector<1x8x128xf32>
    %c0_38 = arith.constant 0 : index
    %c0_39 = arith.constant 0 : index
    %c0_40 = arith.constant 0 : index
    %163 = vector.load %arg15[%c0_38, %c0_39, %c0_40] : memref<1x8x128xf32, #tpu.memory_space<vmem>>, vector<1x8x128xf32>
    tpu.vector_store %arg15[%c0_38, %c0_39, %c0_40], %162 {strides = array<i32>} : memref<1x8x128xf32, #tpu.memory_space<vmem>>, vector<1x8x128xf32>,
    return
  }
  func.func @transform_0(%arg0: i32) -> (i32, i32, i32) {
    %c0_i32 = arith.constant 0 : i32
    %c0_i32_0 = arith.constant 0 : i32
    %c0_i32_1 = arith.constant 0 : i32
    return %arg0, %c0_i32, %c0_i32_0 : i32, i32, i32
  }
  func.func @transform_1(%arg0: i32) -> (i32, i32, i32) {
    %c0_i32 = arith.constant 0 : i32
    %c0_i32_0 = arith.constant 0 : i32
    %c0_i32_1 = arith.constant 0 : i32
    return %arg0, %c0_i32, %c0_i32_0 : i32, i32, i32
  }
  func.func @transform_2(%arg0: i32) -> (i32, i32, i32) {
    %c0_i32 = arith.constant 0 : i32
    %c0_i32_0 = arith.constant 0 : i32
    %c0_i32_1 = arith.constant 0 : i32
    return %arg0, %c0_i32, %c0_i32_0 : i32, i32, i32
  }
  func.func @transform_3(%arg0: i32) -> (i32, i32) {
    %c0_i32 = arith.constant 0 : i32
    %c0_i32_0 = arith.constant 0 : i32
    %c0_i32_1 = arith.constant 0 : i32
    return %c0_i32, %c0_i32_0 : i32, i32
  }
  func.func @transform_4(%arg0: i32) -> (i32, i32) {
    %c0_i32 = arith.constant 0 : i32
    %c0_i32_0 = arith.constant 0 : i32
    %c0_i32_1 = arith.constant 0 : i32
    return %c0_i32, %c0_i32_0 : i32, i32
  }
  func.func @transform_5(%arg0: i32) -> (i32, i32) {
    %c0_i32 = arith.constant 0 : i32
    %c0_i32_0 = arith.constant 0 : i32
    %c0_i32_1 = arith.constant 0 : i32
    return %c0_i32, %c0_i32_0 : i32, i32
  }
  func.func @transform_6(%arg0: i32) -> (i32, i32) {
    %c0_i32 = arith.constant 0 : i32
    %c0_i32_0 = arith.constant 0 : i32
    %c0_i32_1 = arith.constant 0 : i32
    return %c0_i32, %c0_i32_0 : i32, i32
  }
  func.func @transform_7(%arg0: i32) -> (i32, i32) {
    %c0_i32 = arith.constant 0 : i32
    %c0_i32_0 = arith.constant 0 : i32
    %c0_i32_1 = arith.constant 0 : i32
    return %c0_i32, %c0_i32_0 : i32, i32
  }
  func.func @transform_8(%arg0: i32) -> (i32, i32) {
    %c0_i32 = arith.constant 0 : i32
    %c0_i32_0 = arith.constant 0 : i32
    %c0_i32_1 = arith.constant 0 : i32
    return %c0_i32, %c0_i32_0 : i32, i32
  }
  func.func @transform_9(%arg0: i32) -> (i32, i32) {
    %c0_i32 = arith.constant 0 : i32
    %c0_i32_0 = arith.constant 0 : i32
    %c0_i32_1 = arith.constant 0 : i32
    return %c0_i32, %c0_i32_0 : i32, i32
  }
  func.func @transform_10(%arg0: i32) -> (i32, i32) {
    %c0_i32 = arith.constant 0 : i32
    %c0_i32_0 = arith.constant 0 : i32
    %c0_i32_1 = arith.constant 0 : i32
    return %c0_i32, %c0_i32_0 : i32, i32
  }
  func.func @transform_11(%arg0: i32) -> (i32, i32) {
    %c0_i32 = arith.constant 0 : i32
    %c0_i32_0 = arith.constant 0 : i32
    %c0_i32_1 = arith.constant 0 : i32
    return %c0_i32, %c0_i32_0 : i32, i32
  }
  func.func @transform_12(%arg0: i32) -> (i32, i32) {
    %c0_i32 = arith.constant 0 : i32
    %c0_i32_0 = arith.constant 0 : i32
    %c0_i32_1 = arith.constant 0 : i32
    return %c0_i32, %c0_i32_0 : i32, i32
  }
  func.func @transform_13(%arg0: i32) -> (i32, i32) {
    %c0_i32 = arith.constant 0 : i32
    %c0_i32_0 = arith.constant 0 : i32
    %c0_i32_1 = arith.constant 0 : i32
    return %c0_i32, %c0_i32_0 : i32, i32
  }
  func.func @transform_14(%arg0: i32) -> (i32, i32, i32) {
    %c0_i32 = arith.constant 0 : i32
    %c0_i32_0 = arith.constant 0 : i32
    %c0_i32_1 = arith.constant 0 : i32
    return %arg0, %c0_i32, %c0_i32_0 : i32, i32, i32
  }
}

</mosaic_0001>

<bundles_post_ra>
// kernel: tpu_custom_call.1
= control target key start
LH: loop header
LB: loop body
LE: loop exit
PB: predicated region body
PF: predicated region fallthrough
CT: control target
= control target key end

     0   :  { %s3472_s0 = inlined_call_operand.hbm [shape: f32[2,8,8], index: 0, kind: input, shape index: {}]   ;;  %s3473_s1 = inlined_call_operand.hbm [shape: f32[2,8,8], index: 1, kind: input, shape index: {}]   ;;  %s3474_s2 = inlined_call_operand.hbm [shape: f32[2,8,128], index: 2, kind: input, shape index: {}]   ;;  %s3475_s3 = inlined_call_operand.hbm [shape: bf16[128,128], index: 3, kind: input, shape index: {}]   ;;  %s3476_s4 = inlined_call_operand.vmem [shape: f32[1,128], index: 4, kind: input, shape index: {}]   ;;  %s3477_s5 = inlined_call_operand.hbm [shape: bf16[128,128], index: 5, kind: input, shape index: {}]   ;;  %s3478_s6 = inlined_call_operand.vmem [shape: f32[1,128], index: 6, kind: input, shape index: {}]   ;;  %s3479_s7 = inlined_call_operand.vmem [shape: f32[1,128], index: 7, kind: input, shape index: {}]   ;;  %s3480_s8 = inlined_call_operand.vmem [shape: f32[1,128], index: 8, kind: input, shape index: {}]   ;;  %s3481_s9 = inlined_call_operand.hbm [shape: bf16[128,384], index: 9, kind: input, shape index: {}]   ;;  %s3482_s10 = inlined_call_operand.hbm [shape: bf16[128,384], index: 10, kind: input, shape index: {}]   ;;  %s3483_s11 = inlined_call_operand.vmem [shape: f32[1,384], index: 11, kind: input, shape index: {}]   ;;  %s3484_s12 = inlined_call_operand.hbm [shape: bf16[128,384], index: 12, kind: input, shape index: {}]   ;;  %s3485_s13 = inlined_call_operand.vmem [shape: f32[1,384], index: 13, kind: input, shape index: {}]   ;;  %s3486_s14 = inlined_call_operand.hbm [shape: f32[2,8,128], index: 14, kind: output, shape index: {}]  }
   0x1   :  { %3516 = sst [smem:[#allocation30_spill]] %s3473_s1 }
   0x2   :  { %3517 = sst [smem:[#allocation31_spill]] %s3475_s3 }
   0x3   :  { %3518 = sst [smem:[#allocation32_spill]] %s3476_s4 }
   0x4   :  { %3519 = sst [smem:[#allocation33_spill]] %s3478_s6 }
   0x5   :  { %3520 = sst [smem:[#allocation34_spill]] %s3479_s7 }
   0x6   :  { %3521 = sst [smem:[#allocation35_spill]] %s3480_s8 }
   0x7   :  { %3522 = sst [smem:[#allocation36_spill]] %s3481_s9 }
   0x8   :  { %3523 = sst [smem:[#allocation37_spill]] %s3483_s11 }
   0x9   :  { %3524 = sst [smem:[#allocation38_spill]] %s3485_s13 }
   0xa   :  { %3525 = sst [smem:[#allocation39_spill]] %s3486_s14 }
   0xb   :  { %19 = vsyncpa [#allocation3], 0 }
   0xc   :  { %21 = vsyncpa [#allocation3 + $0x1], 0 }
   0xd   :  { %22 = vsyncpa [#allocation6], 0 }
   0xe   :  { %24 = vsyncpa [#allocation6 + $0x1], 0 }
   0xf   :  { %25 = vsyncpa [#allocation9], 0 }
  0x10   :  { %26 = vsyncpa [#allocation12], 0 }
  0x11   :  { %27 = vsyncpa [#allocation15], 0 }
  0x12   :  { %28 = vsyncpa [#allocation4], 0 }
  0x13   :  { %30 = vsyncpa [#allocation4 + $0x1], 0  ;;  %s2941_s29 = smov 0   ;;  %s2943_s30 = smov 0  }
  0x14   :  { %s2945_s15 = smov 0   ;;  %s2947_s16 = smov 0  }
  0x15 LB: > { %3526 = sst [smem:[#allocation23_spill]] %s2829_s29  ;;  %s2843_s17 = smov [#allocation8]   ;;  %s2841_s16 = sphi %s2947_s16, %s3577_s16   ;;  %s2837_s15 = sphi %s2945_s15, %s3581_s15   ;;  %s2833_s30 = sphi %s2943_s30, %s3580_s30   ;;  %s2829_s29 = sphi %s2941_s29, %s3579_s29  }
  0x16   : > { %3527 = sst [smem:[#allocation24_spill]] %s2841_s16  ;;  %s388_s18 = sshll.u32 %s2843_s17, 4  ;;  %s2967_s18 = int_to_ptr.vmem [resolvable:$true] %s388_s18 }
  0x17   : > { %s2962_s19 = sadd.s32 4294967295, %s2841_s16   ;;  %p1991_p0 = scmp.ge.s32.totalorder %s2841_s16, 1 }
  0x18   : > { %3528 = sst [smem:[#allocation25_spill]] %s2962_s19  ;;  %p3501_p1 = scmp.eq.s32.totalorder %s2962_s19, 0 }
  0x19   : > { %p376_p2 = scmp.lt.s32.totalorder %s2841_s16, 3  ;;  %s2844_s21 = smov [#allocation11]  }
  0x1a   : > { %s426_s22 = sshll.u32 %s2844_s21, 4  ;;  %s3531_s3 = sld [smem:[#allocation31_spill]]  ;;  %s2982_s22 = int_to_ptr.vmem [resolvable:$true] %s426_s22 }
  0x1b   : > { %p2969_p3 = pnand %p1991_p0, %p376_p2 }
  0x1d   : > { %s3529_s20 = scalar_select %p2969_p3, 1, 0 }
  0x1e   : > { %p2297_p5 = pneg %p2969_p3 }
  0x20   : > { %p2978_p6 = pnand %p2297_p5, %p3501_p1  ;;  %s2529_s26 = scalar_lea.hbm %s3531_s3, 1024 }
  0x21   : > { %p2530_p7 = scmp.ne.s32.totalorder %s3531_s3, %s2529_s26  ;;  %p2536_p11 = scmp.lt.u32.totalorder %s2529_s26, %s3531_s3 }
  0x22   : > { %s3530_s23 = scalar_select %p2978_p6, 1, 0 }
  0x23   : > { %p2992_p8 = pneg %p2978_p6 }
  0x25   : > { %s3532_s17 = scalar_select %p2992_p8, 1, 0 }
  0x26   : > { %p2532_p9 = pnand %p2992_p8, %p2530_p7 }
  0x28   : > { %p2533_p10 = pneg %p2532_p9 }
  0x2a   : > { %p2538_p12 = pnand %p2536_p11, %p2533_p10 }
  0x2c   : > { %2541 = shalt.err (!%p2538_p12)
}
  0x2d   : > { %s2542_s24 = scalar_lea.vmem %s2967_s18, 1024  ;;  %p2550_p5 = scmp.lt.s32.totalorder %s2967_s18, %s2967_s18 }
  0x2e   : > { %p2543_p13 = scmp.ne.s32.totalorder %s2967_s18, %s2542_s24  ;;  %p2551_p4 = scmp.lt.s32.totalorder %s2542_s24, %s2542_s24 }
  0x30   : > { %p2545_p0 = pnand %p2543_p13, %p2992_p8  ;;  %p2552_p7 = por %p2551_p4, %p2550_p5 }
  0x32   : > { %p2546_p2 = pneg %p2545_p0 }
  0x34   : > { %p2553_p9 = pnand %p2552_p7, %p2546_p2 }
  0x36   : > { %2556 = shalt.err (!%p2553_p9)
}
  0x37   : > { %s3493_s25 = smov 64   ;;  %s3494_s14 = smov 4  }
  0x38   : > { %2300 = dma.hbm_to_vmem [thread:$0]  (!%p2978_p6), %s3531_s3, 1024, %s2967_s18, [#allocation9], %s3493_s25, %s3493_s25, %s3494_s14  }
  0x39   : > { %s3533_s9 = sld [smem:[#allocation36_spill]] }
  0x3f   : > { %s2557_s24 = scalar_lea.hbm %s3533_s9, 3072 }
  0x40   : > { %p2558_p4 = scmp.ne.s32.totalorder %s3533_s9, %s2557_s24  ;;  %p2564_p12 = scmp.lt.u32.totalorder %s2557_s24, %s3533_s9 }
  0x42   : > { %p2560_p10 = pnand %p2558_p4, %p2992_p8 }
  0x44   : > { %p2561_p11 = pneg %p2560_p10 }
  0x46   : > { %p2566_p13 = pnand %p2564_p12, %p2561_p11 }
  0x48   : > { %2569 = shalt.err (!%p2566_p13)
}
  0x49   : > { %s2570_s18 = scalar_lea.vmem %s2982_s22, 3072  ;;  %p2578_p7 = scmp.lt.s32.totalorder %s2982_s22, %s2982_s22 }
  0x4a   : > { %p2571_p0 = scmp.ne.s32.totalorder %s2982_s22, %s2570_s18  ;;  %p2579_p9 = scmp.lt.s32.totalorder %s2570_s18, %s2570_s18 }
  0x4c   : > { %p2573_p2 = pnand %p2571_p0, %p2992_p8  ;;  %p2580_p4 = por %p2579_p9, %p2578_p7 }
  0x4e   : > { %p2574_p5 = pneg %p2573_p2 }
  0x50   : > { %p2581_p10 = pnand %p2580_p4, %p2574_p5 }
  0x52   : > { %2584 = shalt.err (!%p2581_p10)
}
  0x53   : > { %s3489_s11 = smov 192   ;;  %s3491_s7 = smov 12  }
  0x54   : > { %2306 = dma.hbm_to_vmem [thread:$0]  (!%p2978_p6), %s3533_s9, 3072, %s2982_s22, [#allocation12], %s3489_s11, %s3489_s11, %s3491_s7  }
  0x55   : > { %s1990_s26 = sadd.s32 4294967294, %s2841_s16   ;;  %s3044_s27 = sadd.s32 1, %s2841_s16  }
  0x56   : > { %3534 = sst [smem:[#allocation26_spill]] %s3044_s27  ;;  %s40_s28 = ssub.s32 %s2841_s16, %s3044_s27 }
  0x57   : > { %s43_s21 = sadd.s32 1, %s2837_s15  ;;  %p41_p11 = scmp.eq.s32.totalorder %s40_s28, 0 }
  0x58   : > { %p50_p12 = scmp.ne.s32.totalorder %s2837_s15, %s2833_s30  ;;  %p51_p13 = scmp.eq.s32.totalorder %s2841_s16, 0 }
  0x59   : > { %p56_p0 = scmp.ne.s32.totalorder %s2833_s30, %s2829_s29  ;;  %p363_p7 = scmp.eq.s32.totalorder %s2962_s19, 1 }
  0x5a   : > { %s3055_s24 = scalar_select %p41_p11, %s2837_s15, %s43_s21  }
  0x5b   : > { %p52_p2 = por %p51_p13, %p50_p12  ;;  %p3059_p5 = por %p3501_p1, %p56_p0 }
  0x5c   : > { %3535 = sst [smem:[#allocation27_spill]] %s3055_s24  ;;  %p369_p9 = scmp.eq.s32.totalorder %s1990_s26, 1 }
  0x5d   : > { %s3536_s18 = scalar_select %p3059_p5, 1, 0 }
  0x5e   : > { %p2332_p4 = scmp.lt.s32.totalorder %s2841_s16, 2  ;;  %s3495_s22 = sand.u32 1, %s2837_s15  }
  0x5f   : > { %p3066_p10 = por %p363_p7, %p50_p12  ;;  %p3070_p3 = por %p369_p9, %p56_p0 }
  0x60   : > { %s3076_s28 = sshll.u32 %s3495_s22, 3  ;;  %s3079_s21 = sshll.u32 %s2841_s16, 7 }
  0x61   : > { %s3537_s8 = scalar_select %p3066_p10, 1, 0 }
  0x62   : > { %s3539_s13 = scalar_select %p3070_p3, 1, 0 }
  0x63   : > { %3538 = sst [smem:[#allocation28_spill]] %s3537_s8  ;;  %p3081_p11 = pnand %p2332_p4, %p52_p2 }
  0x64   : > { %3540 = sst [smem:[#allocation29_spill]] %s3539_s13  ;;  %s490_s26 = sand.u32 1, %s2841_s16  }
  0x65   : > { %s3541_s11 = scalar_select %p3081_p11, 1, 0 }
  0x66   : > { %s3542_s1 = sld [smem:[#allocation30_spill]]  ;;  %s494_s22 = scalar_lea.vmem [#allocation5], %s3076_s28 }
  0x67   : > { %s501_s3 = sshll.u32 %s494_s22, 4  ;;  %s2849_s9 = smov [#allocation10]   ;;  %s3093_s3 = int_to_ptr.vmem [resolvable:$true] %s501_s3 }
  0x68   : > { %s3095_s24 = sshll.u32 %s2849_s9, 4  ;;  %s3097_s27 = scalar_lea.sflag [#allocation6], %s490_s26  ;;  %s405_s24 = int_to_ptr.vmem [resolvable:$true] %s3095_s24 }
  0x69   : > { %p3103_p13 = pneg %p3081_p11 }
  0x6b   : > { %s3543_s25 = scalar_select %p3103_p13, 1, 0 }
  0x6c   : > { %s3090_s14 = scalar_lea.hbm %s3542_s1, %s3079_s21  ;;  %s2590_s16 = scalar_lea.hbm %s3542_s1, 256 }
  0x6d   : > { %s2585_s13 = scalar_lea.hbm %s3090_s14, 128  ;;  %p2591_p7 = scmp.lt.u32.totalorder %s3090_s14, %s3542_s1 }
  0x6e   : > { %p2586_p12 = scmp.ne.s32.totalorder %s3090_s14, %s2585_s13  ;;  %p2592_p9 = scmp.lt.u32.totalorder %s2590_s16, %s2585_s13 }
  0x6f   : > { %p2594_p1 = scmp.lt.u32.totalorder %s2585_s13, %s3090_s14 }
  0x70   : > { %p2588_p0 = pnand %p3103_p13, %p2586_p12  ;;  %p2593_p4 = por %p2592_p9, %p2591_p7 }
  0x72   : > { %p2589_p2 = pneg %p2588_p0  ;;  %p2595_p3 = por %p2594_p1, %p2593_p4 }
  0x74   : > { %p2596_p10 = pnand %p2595_p3, %p2589_p2 }
  0x76   : > { %2599 = shalt.err (!%p2596_p10)
}
  0x77   : > { %s2600_s26 = scalar_lea.vmem %s3093_s3, 128  ;;  %s2850_s7 = smov [#allocation5]  }
  0x78   : > { %p2601_p12 = scmp.ne.s32.totalorder %s3093_s3, %s2600_s26  ;;  %s2605_s22 = sshll.u32 %s2850_s7, 4  ;;  %s2606_s22 = int_to_ptr.vmem [resolvable:$false] %s2605_s22 }
  0x79   : > { %s2607_s29 = scalar_lea.vmem %s2606_s22, 256  ;;  %p2608_p6 = scmp.lt.s32.totalorder %s3093_s3, %s2606_s22 }
  0x7a   : > { %p2603_p0 = pnand %p2601_p12, %p3103_p13  ;;  %p2609_p8 = scmp.lt.s32.totalorder %s2607_s29, %s2600_s26 }
  0x7c   : > { %p2604_p5 = pneg %p2603_p0  ;;  %p2610_p7 = por %p2609_p8, %p2608_p6 }
  0x7e   : > { %p2611_p9 = pnand %p2610_p7, %p2604_p5 }
  0x80   : > { %2614 = shalt.err (!%p2611_p9)
}
  0x81   : > { %2319 = dma.hbm_to_vmem [thread:$0]  (!%p3081_p11), %s3090_s14, 128, %s3093_s3, %s3097_s27  }
  0x82   : > { %s2615_s9 = scalar_lea.hbm %s3477_s5, 1024  ;;  %p3544_p3 = scmp.ne.s32.totalorder %s3532_s17, 0 }
  0x83   : > { %p2616_p1 = scmp.ne.s32.totalorder %s3477_s5, %s2615_s9  ;;  %p2622_p5 = scmp.lt.u32.totalorder %s2615_s9, %s3477_s5 }
  0x85   : > { %p2618_p6 = pnand %p2616_p1, %p3544_p3 }
  0x87   : > { %p2619_p8 = pneg %p2618_p6 }
  0x89   : > { %p2624_p10 = pnand %p2622_p5, %p2619_p8 }
  0x8b   : > { %2627 = shalt.err (!%p2624_p10)
}
  0x8c   : > { %s2628_s29 = scalar_lea.vmem %s405_s24, 1024  ;;  %p2636_p0 = scmp.lt.s32.totalorder %s405_s24, %s405_s24 }
  0x8d   : > { %p2629_p2 = scmp.ne.s32.totalorder %s405_s24, %s2628_s29  ;;  %p2637_p7 = scmp.lt.s32.totalorder %s2628_s29, %s2628_s29 }
  0x8f   : > { %p2631_p4 = pnand %p2629_p2, %p3544_p3  ;;  %p2638_p9 = por %p2637_p7, %p2636_p0 }
  0x91   : > { %p2632_p12 = pneg %p2631_p4 }
  0x93   : > { %p2639_p11 = pnand %p2638_p9, %p2632_p12 }
  0x95   : > { %2642 = shalt.err (!%p2639_p11)
}
  0x96   : > { %p3545_p1 = scmp.ne.s32.totalorder %s3530_s23, 0  ;;  %s3546_s1 = smov 4  }
  0x97   : > { %s3547_s3 = smov 64   ;;  %s2851_s13 = smov [#allocation13]  }
  0x98   : > { %2303 = dma.hbm_to_vmem [thread:$0]  (!%p3545_p1), %s3477_s5, 1024, %s405_s24, [#allocation9], %s3547_s3, %s3547_s3, %s3546_s1  }
  0x99   : > { %s439_s9 = sshll.u32 %s2851_s13, 4  ;;  %s2852_s7 = smov [#allocation14]   ;;  %s440_s9 = int_to_ptr.vmem [resolvable:$true] %s439_s9 }
  0x9a   : > { %s455_s26 = sshll.u32 %s2852_s7, 4  ;;  %s2643_s8 = scalar_lea.hbm %s3482_s10, 3072  ;;  %s456_s26 = int_to_ptr.vmem [resolvable:$true] %s455_s26 }
  0x9b   : > { %p2644_p11 = scmp.ne.s32.totalorder %s3482_s10, %s2643_s8  ;;  %p2650_p5 = scmp.lt.u32.totalorder %s2643_s8, %s3482_s10 }
  0x9d   : > { %p2646_p6 = pnand %p2644_p11, %p3544_p3 }
  0x9f   : > { %p2647_p8 = pneg %p2646_p6 }
  0xa1   : > { %p2652_p10 = pnand %p2650_p5, %p2647_p8 }
  0xa3   : > { %2655 = shalt.err (!%p2652_p10)
}
  0xa4   : > { %s2656_s24 = scalar_lea.vmem %s440_s9, 3072  ;;  %p2664_p0 = scmp.lt.s32.totalorder %s440_s9, %s440_s9 }
  0xa5   : > { %p2657_p2 = scmp.ne.s32.totalorder %s440_s9, %s2656_s24  ;;  %p2665_p7 = scmp.lt.s32.totalorder %s2656_s24, %s2656_s24 }
  0xa7   : > { %p2659_p4 = pnand %p2657_p2, %p3544_p3  ;;  %p2666_p9 = por %p2665_p7, %p2664_p0 }
  0xa9   : > { %p2660_p12 = pneg %p2659_p4 }
  0xab   : > { %p2667_p13 = pnand %p2666_p9, %p2660_p12 }
  0xad   : > { %2670 = shalt.err (!%p2667_p13)
}
  0xae   : > { %s3548_s4 = smov 12   ;;  %s3549_s6 = smov 192  }
  0xaf   : > { %2309 = dma.hbm_to_vmem [thread:$0]  (!%p3545_p1), %s3482_s10, 3072, %s440_s9, [#allocation12], %s3549_s6, %s3549_s6, %s3548_s4  }
  0xb0   : > { %s2671_s16 = scalar_lea.hbm %s3484_s12, 3072 }
  0xb1   : > { %p2672_p11 = scmp.ne.s32.totalorder %s3484_s12, %s2671_s16  ;;  %p2678_p8 = scmp.lt.u32.totalorder %s2671_s16, %s3484_s12 }
  0xb3   : > { %p2674_p13 = pnand %p2672_p11, %p3544_p3 }
  0xb5   : > { %p2675_p6 = pneg %p2674_p13 }
  0xb7   : > { %p2680_p5 = pnand %p2678_p8, %p2675_p6 }
  0xb9   : > { %2683 = shalt.err (!%p2680_p5)
}
  0xba   : > { %s2684_s14 = scalar_lea.vmem %s456_s26, 3072  ;;  %p2692_p12 = scmp.lt.s32.totalorder %s456_s26, %s456_s26 }
  0xbb   : > { %p2685_p10 = scmp.ne.s32.totalorder %s456_s26, %s2684_s14  ;;  %p2693_p0 = scmp.lt.s32.totalorder %s2684_s14, %s2684_s14 }
  0xbd   : > { %p2687_p2 = pnand %p2685_p10, %p3544_p3  ;;  %p2694_p7 = por %p2693_p0, %p2692_p12 }
  0xbf   : > { %p2688_p4 = pneg %p2687_p2 }
  0xc1   : > { %p2695_p9 = pnand %p2694_p7, %p2688_p4 }
  0xc3   : > { %2698 = shalt.err (!%p2695_p9)
}
  0xc4   : > { %2312 = dma.hbm_to_vmem [thread:$0]  (!%p3545_p1), %s3484_s12, 3072, %s456_s26, [#allocation15], %s3549_s6, %s3549_s6, %s3548_s4  }
  0xc5   : > { %s3195_s8 = scalar_lea.hbm %s3472_s0, %s3079_s21  ;;  %s476_s23 = scalar_lea.vmem [#allocation2], %s3076_s28 }
  0xc6   : > { %s483_s1 = sshll.u32 %s476_s23, 4  ;;  %s3204_s13 = scalar_lea.hbm %s3474_s2, %s3079_s21  ;;  %s3198_s1 = int_to_ptr.vmem [resolvable:$true] %s483_s1 }
  0xc7   : > { %s3550_s7 = sand.u32 1, %s2837_s15   ;;  %s2699_s4 = scalar_lea.hbm %s3195_s8, 128 }
  0xc8   : > { %s473_s26 = scalar_lea.sflag [#allocation3], %s3550_s7  ;;  %p2700_p3 = scmp.ne.s32.totalorder %s3195_s8, %s2699_s4 }
  0xc9   : > { %p3551_p1 = scmp.ne.s32.totalorder %s3543_s25, 0  ;;  %s2704_s29 = scalar_lea.hbm %s3472_s0, 256 }
  0xca   : > { %p2705_p6 = scmp.lt.u32.totalorder %s3195_s8, %s3472_s0  ;;  %p2706_p8 = scmp.lt.u32.totalorder %s2704_s29, %s2699_s4 }
  0xcb   : > { %p2702_p11 = pnand %p2700_p3, %p3551_p1  ;;  %p2708_p10 = scmp.lt.u32.totalorder %s2699_s4, %s3195_s8 }
  0xcc   : > { %p2707_p5 = por %p2706_p8, %p2705_p6 }
  0xcd   : > { %p2703_p13 = pneg %p2702_p11 }
  0xce   : > { %p2709_p2 = por %p2708_p10, %p2707_p5 }
  0xd0   : > { %p2710_p4 = pnand %p2709_p2, %p2703_p13 }
  0xd2   : > { %2713 = shalt.err (!%p2710_p4)
}
  0xd3   : > { %s2714_s21 = scalar_lea.vmem %s3198_s1, 128  ;;  %s2853_s24 = smov [#allocation2]  }
  0xd4   : > { %p2715_p12 = scmp.ne.s32.totalorder %s3198_s1, %s2714_s21  ;;  %s2719_s17 = sshll.u32 %s2853_s24, 4  ;;  %s2720_s17 = int_to_ptr.vmem [resolvable:$false] %s2719_s17 }
  0xd5   : > { %s2721_s19 = scalar_lea.vmem %s2720_s17, 256  ;;  %p2722_p9 = scmp.lt.s32.totalorder %s3198_s1, %s2720_s17 }
  0xd6   : > { %p2717_p0 = pnand %p2715_p12, %p3551_p1  ;;  %p2723_p3 = scmp.lt.s32.totalorder %s2721_s19, %s2714_s21 }
  0xd8   : > { %p2718_p7 = pneg %p2717_p0  ;;  %p2724_p11 = por %p2723_p3, %p2722_p9 }
  0xda   : > { %p2725_p6 = pnand %p2724_p11, %p2718_p7 }
  0xdc   : > { %2728 = shalt.err (!%p2725_p6)
}
  0xdd   : > { %p3552_p13 = scmp.ne.s32.totalorder %s3541_s11, 0  ;;  %s512_s23 = scalar_lea.vmem [#allocation7], %s3076_s28 }
  0xde   : > { %s519_s3 = sshll.u32 %s512_s23, 4  ;;  %s2729_s16 = scalar_lea.hbm %s3204_s13, 128  ;;  %s520_s3 = int_to_ptr.vmem [resolvable:$true] %s519_s3 }
  0xdf   : > { %2316 = dma.hbm_to_vmem [thread:$0]  (!%p3552_p13), %s3195_s8, 128, %s3198_s1, %s473_s26  }
  0xe0   : > { %p2730_p8 = scmp.ne.s32.totalorder %s3204_s13, %s2729_s16  ;;  %s2734_s6 = scalar_lea.hbm %s3474_s2, 256 }
  0xe1   : > { %p2735_p2 = scmp.lt.u32.totalorder %s3204_s13, %s3474_s2  ;;  %p2736_p4 = scmp.lt.u32.totalorder %s2734_s6, %s2729_s16 }
  0xe2   : > { %p2732_p5 = pnand %p2730_p8, %p3551_p1  ;;  %p2738_p0 = scmp.lt.u32.totalorder %s2729_s16, %s3204_s13 }
  0xe3   : > { %p2737_p12 = por %p2736_p4, %p2735_p2 }
  0xe4   : > { %p2733_p10 = pneg %p2732_p5 }
  0xe5   : > { %p2739_p7 = por %p2738_p0, %p2737_p12 }
  0xe7   : > { %p2740_p9 = pnand %p2739_p7, %p2733_p10 }
  0xe9   : > { %2743 = shalt.err (!%p2740_p9)
}
  0xea   : > { %s2744_s28 = scalar_lea.vmem %s520_s3, 128  ;;  %s2854_s8 = smov [#allocation7]  }
  0xeb   : > { %p2745_p3 = scmp.ne.s32.totalorder %s520_s3, %s2744_s28  ;;  %s2749_s1 = sshll.u32 %s2854_s8, 4  ;;  %s2750_s1 = int_to_ptr.vmem [resolvable:$false] %s2749_s1 }
  0xec   : > { %s2751_s26 = scalar_lea.vmem %s2750_s1, 256  ;;  %p2752_p8 = scmp.lt.s32.totalorder %s520_s3, %s2750_s1 }
  0xed   : > { %p2747_p11 = pnand %p2745_p3, %p3551_p1  ;;  %p2753_p5 = scmp.lt.s32.totalorder %s2751_s26, %s2744_s28 }
  0xef   : > { %p2748_p6 = pneg %p2747_p11  ;;  %p2754_p13 = por %p2753_p5, %p2752_p8 }
  0xf1   : > { %p2755_p2 = pnand %p2754_p13, %p2748_p6 }
  0xf3   : > { %2758 = shalt.err (!%p2755_p2)
}
  0xf4   : > { %p3553_p4 = scmp.ne.s32.totalorder %s3541_s11, 0  ;;  %p3554_p10 = scmp.ne.s32.totalorder %s3529_s20, 0 }
  0xf5   : > { %s3251_s25 = sand.u32 (!%p3554_p10), 1, %s2833_s30   ;;  %p3555_p1 = scmp.ne.s32.totalorder (!%p3554_p10), %s3536_s18, 0 }
  0xf6   : > { %2322 = dma.hbm_to_vmem [thread:$0]  (!%p3553_p4), %s3204_s13, 128, %s520_s3, %s3097_s27  }
  0xf7   : > { %528 = sbr.rel (%p3554_p10) target bundleno = 884 (0x374), region = 76  ;;  %s3254_s14 = sshll.u32 (!%p3554_p10), %s3251_s25, 3 }
  0xf8   : > { %s531_s9 = scalar_lea.sflag (!%p3554_p10), [#allocation3], %s3251_s25  ;;  %s534_s21 = scalar_lea.vmem (!%p3554_p10), [#allocation2], %s3254_s14 }
  0xfe   : > { %2804 = dma.done.wait (%p3555_p1), %s531_s9, 128  }
  0xff   : > { %2806 = vsyncadd (%p3555_p1), %s531_s9, 4294967168  ;;  %s3556_s11 = sld [smem:[#allocation25_spill]]  ;;  %s543_s13 = scalar_lea.vmem [#allocation5], %s3254_s14 }
 0x105   : > { %s539_s20 = sand.u32 1, %s3556_s11  }
 0x106   : > { %s540_s27 = scalar_lea.sflag [#allocation6], %s539_s20 }
 0x107   : > { %2808 = dma.done.wait (%p3555_p1), %s540_s27, 256  }
 0x108   : > { %2810 = vsyncadd (%p3555_p1), %s540_s27, 4294967040  ;;  %s552_s24 = scalar_lea.vmem [#allocation7], %s3254_s14  ;;  %p3557_p13 = scmp.eq.s32.totalorder %s3556_s11, 0 }
 0x10a   : > { %2812 = dma.done.wait (%p3557_p13), [#allocation9], 2048   ;;  %p3558_p12 = pmov %p3557_p13 }
 0x10c   : > { %2814 = vsyncadd (%p3558_p12), [#allocation9], 4294965248  ;;  %p3559_p0 = pmov %p3558_p12 }
 0x10e   : > { %2816 = dma.done.wait (%p3559_p0), [#allocation12], 6144   ;;  %p3560_p7 = pmov %p3559_p0 }
 0x10f   : > { %p3561_p9 = pmov %p3559_p0 }
 0x110   : > { %2818 = vsyncadd (%p3560_p7), [#allocation12], 4294961152 }
 0x111   : > { %2820 = dma.done.wait (%p3561_p9), [#allocation15], 3072   ;;  %p3562_p3 = pmov %p3559_p0 }
 0x112   : > { %v2855_v0 = vmov 0.0   ;;  %vm2856_vm0 = vmmov 0   ;;  %v2857_v1 = vmov 2   ;;  %v2858_v2 = vmov 0   ;;  %v2407_v3 = vld [vmem:[#allocation10] sm:$0xff]   ;;  %v2408_v4 = vld [vmem:[#allocation10 + $0x8] sm:$0xff]  }
 0x113   : > { %2822 = vsyncadd (%p3562_p3), [#allocation15], 4294964224  ;;  %2177 = vmatprep.subr.bf16.mxu1 %v2855_v0  ;;  %2157 = vmatprep.subr.bf16.mxu0 %v2855_v0  ;;  %v2412_v5 = vld [vmem:[#allocation8] sm:$0xff]   ;;  %v2409_v6 = vld [vmem:[#allocation10 + $0x10] sm:$0xff]   ;;  %v2859_v17 = vmov 3   ;;  %v2860_v18 = vmov 1   ;;  %v959_v55 = vlaneseq }
 0x114   : > { %2193 = vmatprep.mubr.msk.bf16.mxu1 %vm2856_vm0, %v2855_v0  ;;  %2173 = vmatprep.mubr.msk.bf16.mxu0 %vm2856_vm0, %v2855_v0  ;;  %v2414_v7 = vld [vmem:[#allocation8 + $0x8] sm:$0xff]   ;;  %v2410_v8 = vld [vmem:[#allocation10 + $0x18] sm:$0xff]   ;;  %v2416_v9 = vld [vmem:[#allocation8 + $0x10] sm:$0xff]   ;;  %v2861_v21 = vmov 4   ;;  %v2862_v26 = vmov 5   ;;  %v2863_v28 = vmov 6  }
 0x115   : > { %2392 = vset.pattern.permute.xlu1 %v2857_v1  ;;  %2390 = vset.pattern.permute.xlu0 %v2858_v2  ;;  %v2411_v10 = vld [vmem:[#allocation10 + $0x20] sm:$0xff]   ;;  %v2418_v11 = vld [vmem:[#allocation8 + $0x18] sm:$0xff]   ;;  %v2413_v13 = vld [vmem:[#allocation10 + $0x28] sm:$0xff]   ;;  %v2864_v33 = vmov 7   ;;  %v3331_v57 = vshrl.u32 %v959_v55, 7  ;;  %s3563_s19 = sld [smem:[#allocation33_spill]] }
 0x116   : > { %2178 = vmatpush3.bf16.msra.mxu1 %v2407_v3  ;;  %2158 = vmatpush3.bf16.msra.mxu0 %v2412_v5  ;;  %v629_v12 = vld [vmem:[%s543_s13] sm:$0xff]  ;;  %v2415_v15 = vld [vmem:[#allocation10 + $0x30] sm:$0xff]   ;;  %v2417_v19 = vld [vmem:[#allocation10 + $0x38] sm:$0xff]   ;;  %s3564_s16 = sld [smem:[#allocation32_spill]]  ;;  %s3565_s6 = sld [smem:[#allocation35_spill]] }
 0x117   : > { %2179 = vmatprep.subr.bf16.mxu1 %v2855_v0  ;;  %2159 = vmatprep.subr.bf16.mxu0 %v2855_v0  ;;  %v2419_v14 = vld [vmem:[#allocation8 + $0x20] sm:$0xff]   ;;  %v2420_v16 = vld [vmem:[#allocation8 + $0x28] sm:$0xff]   ;;  %v3303_v20 = vld [vmem:[%s552_s24] sm:$0xff]  ;;  %v3337_v61 = vsub.s32 0, %v3331_v57  ;;  %v3340_v62 = vsub.s32 1, %v3331_v57  ;;  %v3343_v63 = vsub.s32 2, %v3331_v57 }
 0x118   : > { %1007 = vperm.xlu1 %2392, %v629_v12   ;;  %967 = vperm.xlu0 %2390, %v629_v12   ;;  %v2421_v22 = vld [vmem:[#allocation8 + $0x30] sm:$0xff]   ;;  %v3310_v24 = vpack.c.bf16 %v3303_v20, %v3303_v20  ;;  %v2422_v25 = vld [vmem:[#allocation8 + $0x38] sm:$0xff]   ;;  %v2423_v30 = vld [vmem:[#allocation13] ss:$12 sps:$4 sm:$0xff]   ;;  %v1022_v5 = vsub.s32 3, %v3331_v57  ;;  %s3566_s28 = sld [smem:[#allocation34_spill]] }
 0x119   : > { %v2426_v23 = vld [vmem:[#allocation13 + $0x8] ss:$12 sps:$4 sm:$0xff]   ;;  %v2425_v27 = vld [vmem:[#allocation13 + $0x4] ss:$12 sps:$4 sm:$0xff]   ;;  %v2430_v32 = vld [vmem:[#allocation13 + $0x20] ss:$12 sps:$4 sm:$0xff]  }
 0x11a   : > { %2180 = vmatpush3.bf16.msra.mxu1 %v2408_v4  ;;  %2160 = vmatpush3.bf16.msra.mxu0 %v2414_v7  ;;  %v628_v29 = vld [vmem:[%s534_s21] sm:$0xff]  ;;  %v2439_v42 = vld [vmem:[#allocation13 + $0x60] ss:$12 sps:$4 sm:$0xff]   ;;  %s3567_s26 = sld [smem:[#allocation38_spill]]  ;;  %s3568_s20 = sld [smem:[#allocation37_spill]] }
 0x11b   : > { %2181 = vmatprep.subr.bf16.mxu1 %v2855_v0  ;;  %2161 = vmatprep.subr.bf16.mxu0 %v2855_v0  ;;  %v2429_v31 = vld [vmem:[#allocation13 + $0x1c] ss:$12 sps:$4 sm:$0xff]   ;;  %v2427_v34 = vld [vmem:[#allocation13 + $0x18] ss:$12 sps:$4 sm:$0xff]   ;;  %v2433_v35 = vld [vmem:[#allocation13 + $0x34] ss:$12 sps:$4 sm:$0xff]  }
 0x11c   : > { %2393 = vset.pattern.permute.xlu1 %v2859_v17  ;;  %2391 = vset.pattern.permute.xlu0 %v2860_v18  ;;  %v2431_v36 = vld [vmem:[#allocation13 + $0x30] ss:$12 sps:$4 sm:$0xff]   ;;  %v2434_v37 = vld [vmem:[#allocation13 + $0x38] ss:$12 sps:$4 sm:$0xff]   ;;  %v2435_v39 = vld [vmem:[#allocation13 + $0x48] ss:$12 sps:$4 sm:$0xff]  }
 0x11d   : > { %1027 = vperm.xlu1 %2393, %v629_v12   ;;  %987 = vperm.xlu0 %2391, %v629_v12   ;;  %v2437_v38 = vld [vmem:[#allocation13 + $0x4c] ss:$12 sps:$4 sm:$0xff]   ;;  %v2438_v40 = vld [vmem:[#allocation13 + $0x50] ss:$12 sps:$4 sm:$0xff]   ;;  %v2442_v43 = vld [vmem:[#allocation13 + $0x68] ss:$12 sps:$4 sm:$0xff]  }
 0x11e   : > { %2182 = vmatpush3.bf16.msra.mxu1 %v2409_v6  ;;  %2162 = vmatpush3.bf16.msra.mxu0 %v2416_v9  ;;  %v2441_v41 = vld [vmem:[#allocation13 + $0x64] ss:$12 sps:$4 sm:$0xff]   ;;  %v2445_v44 = vld [vmem:[#allocation13 + $0x7c] ss:$12 sps:$4 sm:$0xff]   ;;  %v2446_v46 = vld [vmem:[#allocation13 + $0x80] ss:$12 sps:$4 sm:$0xff]  }
 0x11f   : > { %2183 = vmatprep.subr.bf16.mxu1 %v2855_v0  ;;  %2163 = vmatprep.subr.bf16.mxu0 %v2855_v0  ;;  %v2443_v45 = vld [vmem:[#allocation13 + $0x78] ss:$12 sps:$4 sm:$0xff]   ;;  %v2449_v47 = vld [vmem:[#allocation13 + $0x94] ss:$12 sps:$4 sm:$0xff]   ;;  %v2447_v48 = vld [vmem:[#allocation13 + $0x90] ss:$12 sps:$4 sm:$0xff]  }
 0x120   : > { %v2450_v49 = vld [vmem:[#allocation13 + $0x98] ss:$12 sps:$4 sm:$0xff]   ;;  %v2451_v50 = vld [vmem:[#allocation13 + $0xa8] ss:$12 sps:$4 sm:$0xff]   ;;  %v2454_v52 = vld [vmem:[#allocation13 + $0xb0] ss:$12 sps:$4 sm:$0xff]  }
 0x121   : > { %2394 = vset.pattern.permute.xlu1 %v2861_v21  ;;  %2395 = vset.pattern.permute.xlu0 %v2862_v26  ;;  %v2453_v51 = vld [vmem:[#allocation13 + $0xac] ss:$12 sps:$4 sm:$0xff]   ;;  %v2457_v53 = vld [vmem:[#allocation11 + $0x4] ss:$12 sps:$4 sm:$0xff]   ;;  %s3569_s27 = sld [smem:[#allocation28_spill]]  ;;  %s2109_s13 = sshll.u32 %s3556_s11, 7 }
 0x122   : > { %2184 = vmatpush3.bf16.msra.mxu1 %v2410_v8  ;;  %2164 = vmatpush3.bf16.msra.mxu0 %v2418_v11  ;;  %v2023_v60 = vld [vmem:[%s3563_s19] ss:$0 sm:$0xff]  ;;  %v1042_v11 = vsub.s32 4, %v3331_v57  ;;  %s626_s24 = scalar_lea.vmem [#allocation16], %s3254_s14  ;;  %s3570_s23 = sld [smem:[#allocation39_spill]] }
 0x123   : > { %2185 = vmatprep.subr.bf16.mxu1 %v2855_v0  ;;  %2165 = vmatprep.subr.bf16.mxu0 %v2855_v0  ;;  %s1829_s18 = sshll.u32 %s626_s24, 4  ;;  %s2865_s14 = smov [#allocation16]   ;;  %s3430_s18 = int_to_ptr.vmem [resolvable:$true] %s1829_s18 }
 0x124   : > { %1047 = vperm.xlu1 %2394, %v629_v12   ;;  %1067 = vperm.xlu0 %2395, %v629_v12   ;;  %s2759_s7 = scalar_lea.vmem %s3430_s18, 128  ;;  %s2763_s11 = sshll.u32 %s2865_s14, 4  ;;  %s2764_s11 = int_to_ptr.vmem [resolvable:$false] %s2763_s11 }
 0x125   : > { %p2760_p11 = scmp.ne.s32.totalorder %s3430_s18, %s2759_s7  ;;  %s2765_s4 = scalar_lea.vmem %s2764_s11, 256 }
 0x126   : > { %2186 = vmatpush3.bf16.msra.mxu1 %v2411_v10  ;;  %2166 = vmatpush3.bf16.msra.mxu0 %v2419_v14  ;;  %p2766_p2 = scmp.lt.s32.totalorder %s3430_s18, %s2764_s11  ;;  %p2767_p4 = scmp.lt.s32.totalorder %s2765_s4, %s2759_s7 }
 0x127   : > { %2187 = vmatprep.subr.bf16.mxu1 %v2855_v0  ;;  %2167 = vmatprep.subr.bf16.mxu0 %v2855_v0  ;;  %p3571_p6 = scmp.ne.s32.totalorder %s3569_s27, 0 }
 0x128   : > { %2396 = vset.pattern.permute.xlu1 %v2863_v28  ;;  %2398 = vset.pattern.permute.xlu0 %v2858_v2  ;;  %s3428_s3 = scalar_lea.hbm %s3570_s23, %s2109_s13  ;;  %p2768_p10 = por %p2767_p4, %p2766_p2 }
 0x129   : > { %1087 = vperm.xlu1 %2396, %v629_v12   ;;  %956 = vperm.xlu0 %2398, %v628_v29   ;;  %p2761_p8 = pnand %p2760_p11, %p3571_p6 }
 0x12a   : > { %2188 = vmatpush3.bf16.msra.mxu1 %v2413_v13  ;;  %2168 = vmatpush3.bf16.msra.mxu0 %v2420_v16 }
 0x12b   : > { %2189 = vmatprep.subr.bf16.mxu1 %v2855_v0  ;;  %2169 = vmatprep.subr.bf16.mxu0 %v2855_v0  ;;  %p2762_p5 = pneg %p2761_p8 }
 0x12d   : > { %2397 = vset.pattern.permute.xlu1 %v2864_v33  ;;  %2401 = vset.pattern.permute.xlu0 %v2859_v17  ;;  %v1062_v17 = vsub.s32 5, %v3331_v57  ;;  %p2769_p1 = pnand %p2768_p10, %p2762_p5 }
 0x12e   : > { %2190 = vmatpush3.bf16.msra.mxu1 %v2415_v15  ;;  %2170 = vmatpush3.bf16.msra.mxu0 %v2421_v22 }
 0x12f   : > { %2191 = vmatprep.subr.bf16.mxu1 %v2855_v0  ;;  %2171 = vmatprep.subr.bf16.mxu0 %v2855_v0 }
 0x130   : > { %1107 = vperm.xlu1 %2397, %v629_v12   ;;  %1017 = vperm.xlu0 %2401, %v628_v29  }
 0x132   : > { %2192 = vmatpush3.bf16.msra.mxu1 %v2417_v19  ;;  %2172 = vmatpush3.bf16.msra.mxu0 %v2422_v25 }
 0x133   : > { %2197 = vmatprep.subr.bf16.mxu1 %v2855_v0  ;;  %1260 = vmatprep.subr.bf16.mxu0 %v2425_v27  ;;  %v2014_v27 = vld [vmem:[%s3564_s16] ss:$0 sm:$0xff]  ;;  %s1816_s16 = scalar_lea.sflag [#allocation4], %s3251_s25 }
 0x134   : > { %2399 = vset.pattern.permute.xlu1 %v2860_v18  ;;  %2404 = vset.pattern.permute.xlu0 %v2863_v28 }
 0x135   : > { %2194 = vmatmul.mubr.bf16.vlgmr.msra.gmra.mrb[0].mxu1 %v3310_v24  ;;  %2174 = vmatmul.mubr.bf16.vlgmr.msra.gmra.mrb[0].mxu0 %v3310_v24 }
 0x136   : > { %2198 = vmatpush3.bf16.msra.mxu1 %v2426_v23  ;;  %2213 = vmatprep.mubr.msk.bf16.mxu1 %vm2856_vm0, %v2855_v0 }
 0x137   : > { %2199 = vmatprep.subr.bf16.mxu1 %v2855_v0  ;;  %1261 = vmatpush1.bf16.msra.mxu0 %v2423_v30  ;;  %v1102_v30 = vsub.s32 7, %v3331_v57 }
 0x138   : > { %1262 = vmatprep.subr.bf16.mxu0 %v2429_v31  ;;  %1292 = vmatprep.mubr.bf16.mxu0 %v2858_v2 }
 0x139   : > { %977 = vperm.xlu1 %2399, %v628_v29   ;;  %1077 = vperm.xlu0 %2404, %v628_v29  }
 0x13a   : > { %2200 = vmatpush3.bf16.msra.mxu1 %v2430_v32 }
 0x13b   : > { %2201 = vmatprep.subr.bf16.mxu1 %v2855_v0  ;;  %1263 = vmatpush1.bf16.msra.mxu0 %v2427_v34 }
 0x13c   : > { %1264 = vmatprep.subr.bf16.mxu0 %v2433_v35 }
 0x13d   : > { %2400 = vset.pattern.permute.xlu1 %v2857_v1  ;;  %2406 = vset.pattern.permute.xlu0 %v2864_v33 }
 0x13e   : > { %997 = vperm.xlu1 %2400, %v628_v29   ;;  %2202 = vmatpush3.bf16.msra.mxu1 %v2434_v37 }
 0x13f   : > { %1265 = vmatpush1.bf16.msra.mxu0 %v2431_v36  ;;  %2203 = vmatprep.subr.bf16.mxu1 %v2855_v0 }
 0x140   : > { %1266 = vmatprep.subr.bf16.mxu0 %v2437_v38 }
 0x142   : > { %2402 = vset.pattern.permute.xlu1 %v2861_v21  ;;  %2204 = vmatpush3.bf16.msra.mxu1 %v2438_v40  ;;  %v1082_v21 = vsub.s32 6, %v3331_v57  ;;  %v2479_v57 = vld [vmem:[#allocation11 + $0x90] ss:$12 sps:$4 sm:$0xff]  }
 0x143   : > { %1037 = vperm.xlu1 %2402, %v628_v29   ;;  %1267 = vmatpush1.bf16.msra.mxu0 %v2435_v39 }
 0x144   : > { %2205 = vmatprep.subr.bf16.mxu1 %v2855_v0  ;;  %1268 = vmatprep.subr.bf16.mxu0 %v2441_v41 }
 0x146   : > { %2206 = vmatpush3.bf16.msra.mxu1 %v2442_v43 }
 0x147   : > { %2403 = vset.pattern.permute.xlu1 %v2862_v26  ;;  %1269 = vmatpush1.bf16.msra.mxu0 %v2439_v42 }
 0x148   : > { %1057 = vperm.xlu1 %2403, %v628_v29   ;;  %2207 = vmatprep.subr.bf16.mxu1 %v2855_v0 }
 0x149   : > { %1270 = vmatprep.subr.bf16.mxu0 %v2445_v44 }
 0x14a   : > { %2208 = vmatpush3.bf16.msra.mxu1 %v2446_v46 }
 0x14b   : > { %1271 = vmatpush1.bf16.msra.mxu0 %v2443_v45  ;;  %2209 = vmatprep.subr.bf16.mxu1 %v2855_v0 }
 0x14c   : > { %2405 = vset.pattern.permute.xlu1 %v2864_v33  ;;  %1272 = vmatprep.subr.bf16.mxu0 %v2449_v47 }
 0x14d   : > { %1097 = vperm.xlu1 %2405, %v628_v29  }
 0x14e   : > { %2210 = vmatpush3.bf16.msra.mxu1 %v2450_v49 }
 0x14f   : > { %1273 = vmatpush1.bf16.msra.mxu0 %v2447_v48  ;;  %2211 = vmatprep.subr.bf16.mxu1 %v2855_v0 }
 0x150   : > { %1274 = vmatprep.subr.bf16.mxu0 %v2453_v51 }
 0x152   : > { %2212 = vmatpush3.bf16.msra.mxu1 %v2454_v52 }
 0x153   : > { %1275 = vmatpush1.bf16.msra.mxu0 %v2451_v50  ;;  %2217 = vmatprep.subr.bf16.mxu1 %v2855_v0  ;;  %v2033_v50 = vld [vmem:[%s3565_s6] ss:$0 sm:$0xff] }
 0x154   : > { %1469 = vmatprep.subr.bf16.mxu0 %v2457_v53 }
 0x197   : > { %v1008_v54 = vpop.permute.xlu1 %1007  ;;  %v968_v59 = vpop.permute.xlu0 %967 }
 0x19c   : > { %v1028_v56 = vpop.permute.xlu1 %1027  ;;  %v988_v13 = vpop.permute.xlu0 %987 }
 0x1a3   : > { %v1048_v58 = vpop.permute.xlu1 %1047  ;;  %v1068_v34 = vpop.permute.xlu0 %1067 }
 0x1a8   : > { %v1088_v12 = vpop.permute.xlu1 %1087  ;;  %v957_v47 = vpop.permute.xlu0 %956 }
 0x1af   : > { %v1108_v33 = vpop.permute.xlu1 %1107 }
 0x1b8   : > { %v978_v42 = vpop.permute.xlu1 %977 }
 0x1bd   : > { %v998_v55 = vpop.permute.xlu1 %997 }
 0x208   : > { %v948_v1 = vpop.f32.mrb[0].mxu1  ;;  %v854_v18 = vpop.f32.mrb[0].mxu0 }
 0x209   : > { %v949_v3 = vadd.f32 %v2023_v60, %v948_v1  ;;  %v2195_v4 = vpop.f32.mrb[1].mxu1  ;;  %v2175_v19 = vpop.f32.mrb[1].mxu0  ;;  %v3360_v38 = vadd.f32 %v2014_v27, %v854_v18 }
 0x20a   : > { %v951_v6 = vpop.f32.mrb[2].mxu1  ;;  %v857_v26 = vpop.f32.mrb[2].mxu0  ;;  %v2461_v4 = vld [vmem:[#allocation11 + $0x1c] ss:$12 sps:$4 sm:$0xff]  }
 0x20b   : > { %v973_v7 = vrot.slane %v949_v3, %v3337_v61  ;;  %v993_v8 = vrot.slane %v949_v3, %v3340_v62  ;;  %v1013_v9 = vrot.slane %v949_v3, %v3343_v63  ;;  %v2196_v10 = vpop.f32.mrb[3].mxu1  ;;  %v1033_v16 = vrot.slane %v949_v3, %v1022_v5  ;;  %v2176_v28 = vpop.f32.mrb[3].mxu0  ;;  %v2470_v26 = vld [vmem:[#allocation11 + $0x50] ss:$12 sps:$4 sm:$0xff]  }
 0x20c   : > { %v1053_v25 = vrot.slane %v949_v3, %v1042_v11  ;;  %v1073_v32 = vrot.slane %v949_v3, %v1062_v17  ;;  %v1093_v35 = vrot.slane %v949_v3, %v1082_v21  ;;  %v1113_v39 = vrot.slane %v949_v3, %v1102_v30  ;;  %v2462_v10 = vld [vmem:[#allocation11 + $0x20] ss:$12 sps:$4 sm:$0xff]  }
 0x20d   : > { %v974_v14 = vmul.f32 %v973_v7, %v968_v59  ;;  %v994_v15 = vmul.f32 %v993_v8, %v988_v13  ;;  %v1014_v22 = vmul.f32 %v1013_v9, %v1008_v54  ;;  %v1034_v31 = vmul.f32 %v1033_v16, %v1028_v56  ;;  %v2458_v59 = vld [vmem:[#allocation11 + $0x8] ss:$12 sps:$4 sm:$0xff]   ;;  %v1018_v7 = vpop.permute.xlu0 %1017  ;;  %v2459_v8 = vld [vmem:[#allocation11 + $0x18] ss:$12 sps:$4 sm:$0xff]   ;;  %v1038_v9 = vpop.permute.xlu1 %1037 }
 0x20e   : > { %v1054_v37 = vmul.f32 %v1053_v25, %v1048_v58  ;;  %v1074_v41 = vmul.f32 %v1073_v32, %v1068_v34  ;;  %v1094_v43 = vmul.f32 %v1093_v35, %v1088_v12  ;;  %v983_v45 = vrot.slane %v3360_v38, %v3340_v62  ;;  %v2455_v58 = vld [vmem:[#allocation11] ss:$12 sps:$4 sm:$0xff]   ;;  %v2466_v16 = vld [vmem:[#allocation11 + $0x38] ss:$12 sps:$4 sm:$0xff]   ;;  %v2467_v25 = vld [vmem:[#allocation11 + $0x48] ss:$12 sps:$4 sm:$0xff]  }
 0x20f   : > { %v995_v23 = vadd.f32 %v994_v15, %v974_v14  ;;  %v962_v46 = vrot.slane %v3360_v38, %v3337_v61  ;;  %v1114_v48 = vmul.f32 %v1113_v39, %v1108_v33  ;;  %v1003_v53 = vrot.slane %v3360_v38, %v3343_v63  ;;  %v2465_v15 = vld [vmem:[#allocation11 + $0x34] ss:$12 sps:$4 sm:$0xff]   ;;  %v2475_v39 = vld [vmem:[#allocation11 + $0x78] ss:$12 sps:$4 sm:$0xff]  }
 0x210   : > { %v984_v52 = vmul.f32 %v983_v45, %v978_v42  ;;  %v1023_v6 = vrot.slane %v3360_v38, %v1022_v5  ;;  %v1043_v12 = vrot.slane %v3360_v38, %v1042_v11  ;;  %v2463_v5 = vld [vmem:[#allocation11 + $0x30] ss:$12 sps:$4 sm:$0xff]   ;;  %v1063_v11 = vrot.slane %v3360_v38, %v1062_v17  ;;  %v2471_v17 = vld [vmem:[#allocation11 + $0x60] ss:$12 sps:$4 sm:$0xff]   ;;  %v2474_v33 = vld [vmem:[#allocation11 + $0x68] ss:$12 sps:$4 sm:$0xff]  }
 0x211   : > { %v1015_v29 = vadd.f32 %v1014_v22, %v995_v23  ;;  %v963_v54 = vmul.f32 %v962_v46, %v957_v47  ;;  %v1004_v60 = vmul.f32 %v1003_v53, %v998_v55  ;;  %v2469_v22 = vld [vmem:[#allocation11 + $0x4c] ss:$12 sps:$4 sm:$0xff]   ;;  %v1058_v23 = vpop.permute.xlu1 %1057  ;;  %v1078_v32 = vpop.permute.xlu0 %1077  ;;  %v2032_v45 = vld [vmem:[%s3566_s28] ss:$0 sm:$0xff]  ;;  %v2483_v46 = vld [vmem:[#allocation11 + $0xa8] ss:$12 sps:$4 sm:$0xff]  }
 0x212   : > { %v1024_v14 = vmul.f32 %v1023_v6, %v1018_v7  ;;  %v1044_v18 = vmul.f32 %v1043_v12, %v1038_v9  ;;  %v1064_v28 = vmul.f32 %v1063_v11, %v1058_v23  ;;  %v2486_v47 = vld [vmem:[#allocation11 + $0xb0] ss:$12 sps:$4 sm:$0xff]   ;;  %v2512_v55 = vld [vmem:[#allocation14 + $0x20] ss:$12 sps:$4 sm:$0xff]   ;;  %v2515_v6 = vld [vmem:[#allocation14 + $0x68] ss:$12 sps:$4 sm:$0xff]  }
 0x213   : > { %v1035_v36 = vadd.f32 %v1034_v31, %v1015_v29  ;;  %v985_v1 = vadd.f32 %v984_v52, %v963_v54  ;;  %v1083_v29 = vrot.slane %v3360_v38, %v1082_v21  ;;  %v2473_v31 = vld [vmem:[#allocation11 + $0x64] ss:$12 sps:$4 sm:$0xff]   ;;  %v2492_v53 = vld [vmem:[#allocation14 + $0x1c] ss:$12 sps:$4 sm:$0xff]   ;;  %v2516_v9 = vld [vmem:[#allocation14 + $0x80] ss:$12 sps:$4 sm:$0xff]  }
 0x214   : > { %v2490_v54 = vld [vmem:[#allocation14 + $0x18] ss:$12 sps:$4 sm:$0xff]   ;;  %v2504_v7 = vld [vmem:[#allocation14 + $0x7c] ss:$12 sps:$4 sm:$0xff]  }
 0x215   : > { %v1055_v40 = vadd.f32 %v1054_v37, %v1035_v36  ;;  %v1005_v13 = vadd.f32 %v1004_v60, %v985_v1  ;;  %v1084_v35 = vmul.f32 %v1083_v29, %v1078_v32  ;;  %v1103_v36 = vrot.slane %v3360_v38, %v1102_v30  ;;  %v2477_v37 = vld [vmem:[#allocation11 + $0x7c] ss:$12 sps:$4 sm:$0xff]   ;;  %v1098_v21 = vpop.permute.xlu1 %1097  ;;  %v2485_v38 = vld [vmem:[#allocation11 + $0xac] ss:$12 sps:$4 sm:$0xff]  }
 0x216   : > { %v2498_v60 = vld [vmem:[#allocation14 + $0x4c] ss:$12 sps:$4 sm:$0xff]   ;;  %v2496_v1 = vld [vmem:[#allocation14 + $0x48] ss:$12 sps:$4 sm:$0xff]   ;;  %v2505_v12 = vld [vmem:[#allocation14 + $0x90] ss:$12 sps:$4 sm:$0xff]  }
 0x217   : > { %v1075_v44 = vadd.f32 %v1074_v41, %v1055_v40  ;;  %v1025_v19 = vadd.f32 %v1024_v14, %v1005_v13  ;;  %v2478_v40 = vld [vmem:[#allocation11 + $0x80] ss:$12 sps:$4 sm:$0xff]   ;;  %v1104_v42 = vmul.f32 %v1103_v36, %v1098_v21  ;;  %v2517_v13 = vld [vmem:[#allocation14 + $0x98] ss:$12 sps:$4 sm:$0xff]  }
 0x218   : > { %v2511_v14 = vld [vmem:[#allocation14 + $0xac] ss:$12 sps:$4 sm:$0xff]  }
 0x219   : > { %v1095_v49 = vadd.f32 %v1094_v43, %v1075_v44  ;;  %v1045_v27 = vadd.f32 %v1044_v18, %v1025_v19  ;;  %v2481_v43 = vld [vmem:[#allocation11 + $0x94] ss:$12 sps:$4 sm:$0xff]   ;;  %v2482_v44 = vld [vmem:[#allocation11 + $0x98] ss:$12 sps:$4 sm:$0xff]  }
 0x21b   : > { %v1115_v51 = vadd.f32 %v1114_v48, %v1095_v49  ;;  %v1065_v34 = vadd.f32 %v1064_v28, %v1045_v27  ;;  %v2489_v49 = vld [vmem:[#allocation14 + $0x4] ss:$12 sps:$4 sm:$0xff]  }
 0x21c   : > { %v763_v28 = vld [vmem:[%s3567_s26] sm:$0x7] }
 0x21d   : > { %v1129_v56 = vadd.f32 %v2033_v50, %v1115_v51  ;;  %v1085_v41 = vadd.f32 %v1084_v35, %v1065_v34  ;;  %v2487_v50 = vld [vmem:[#allocation14] ss:$12 sps:$4 sm:$0xff]   ;;  %v2508_v51 = vld [vmem:[#allocation14 + $0x8] ss:$12 sps:$4 sm:$0xff]   ;;  %v1577_v35 = vrot.slane %v763_v28, %v3340_v62 }
 0x21f   : > { %v1131_v3 = vpack.c.bf16 %v1129_v56, %v1129_v56  ;;  %v1105_v30 = vadd.f32 %v1104_v42, %v1085_v41  ;;  %v2495_v56 = vld [vmem:[#allocation14 + $0x34] ss:$12 sps:$4 sm:$0xff]  }
 0x221   : > { %1293 = vmatmul.mubr.bf16.vlgmr.msra.gmra.mrb[4].mxu0 %v1131_v3  ;;  %2214 = vmatmul.mubr.bf16.vlgmr.msra.gmra.mrb[4].mxu1 %v1131_v3  ;;  %v1122_v48 = vadd.f32 %v2032_v45, %v1105_v30  ;;  %v2514_v3 = vld [vmem:[#allocation14 + $0x50] ss:$12 sps:$4 sm:$0xff]  }
 0x222   : > { %1470 = vmatpush1.bf16.msra.mxu0 %v2455_v58  ;;  %2218 = vmatpush3.bf16.msra.mxu1 %v2458_v59  ;;  %v2493_v58 = vld [vmem:[#allocation14 + $0x30] ss:$12 sps:$4 sm:$0xff]   ;;  %v2513_v59 = vld [vmem:[#allocation14 + $0x38] ss:$12 sps:$4 sm:$0xff]  }
 0x223   : > { %1471 = vmatprep.subr.bf16.mxu0 %v2461_v4  ;;  %2219 = vmatprep.subr.bf16.mxu1 %v2855_v0  ;;  %v1130_v52 = vpack.c.bf16 %v1122_v48, %v1122_v48  ;;  %v2501_v4 = vld [vmem:[#allocation14 + $0x64] ss:$12 sps:$4 sm:$0xff]  }
 0x224   : > { %1501 = vmatprep.mubr.bf16.mxu0 %v2858_v2  ;;  %2233 = vmatprep.mubr.msk.bf16.mxu1 %vm2856_vm0, %v2855_v0 }
 0x226   : > { %1472 = vmatpush1.bf16.msra.mxu0 %v2459_v8  ;;  %2220 = vmatpush3.bf16.msra.mxu1 %v2462_v10  ;;  %v2502_v8 = vld [vmem:[#allocation14 + $0x78] ss:$12 sps:$4 sm:$0xff]   ;;  %v2507_v10 = vld [vmem:[#allocation14 + $0x94] ss:$12 sps:$4 sm:$0xff]  }
 0x227   : > { %1473 = vmatprep.subr.bf16.mxu0 %v2465_v15  ;;  %2221 = vmatprep.subr.bf16.mxu1 %v2855_v0  ;;  %v2509_v15 = vld [vmem:[#allocation14 + $0xa8] ss:$12 sps:$4 sm:$0xff]  }
 0x22a   : > { %1474 = vmatpush1.bf16.msra.mxu0 %v2463_v5  ;;  %2222 = vmatpush3.bf16.msra.mxu1 %v2466_v16  ;;  %v2518_v5 = vld [vmem:[#allocation14 + $0xb0] ss:$12 sps:$4 sm:$0xff]  }
 0x22b   : > { %1475 = vmatprep.subr.bf16.mxu0 %v2469_v22  ;;  %2223 = vmatprep.subr.bf16.mxu1 %v2855_v0 }
 0x22e   : > { %1476 = vmatpush1.bf16.msra.mxu0 %v2467_v25  ;;  %2224 = vmatpush3.bf16.msra.mxu1 %v2470_v26 }
 0x22f   : > { %1477 = vmatprep.subr.bf16.mxu0 %v2473_v31  ;;  %2225 = vmatprep.subr.bf16.mxu1 %v2855_v0 }
 0x232   : > { %1478 = vmatpush1.bf16.msra.mxu0 %v2471_v17  ;;  %2226 = vmatpush3.bf16.msra.mxu1 %v2474_v33 }
 0x233   : > { %1479 = vmatprep.subr.bf16.mxu0 %v2477_v37  ;;  %2227 = vmatprep.subr.bf16.mxu1 %v2855_v0 }
 0x236   : > { %1480 = vmatpush1.bf16.msra.mxu0 %v2475_v39  ;;  %2228 = vmatpush3.bf16.msra.mxu1 %v2478_v40 }
 0x237   : > { %1481 = vmatprep.subr.bf16.mxu0 %v2481_v43  ;;  %2229 = vmatprep.subr.bf16.mxu1 %v2855_v0 }
 0x23a   : > { %1482 = vmatpush1.bf16.msra.mxu0 %v2479_v57  ;;  %2230 = vmatpush3.bf16.msra.mxu1 %v2482_v44 }
 0x23b   : > { %1483 = vmatprep.subr.bf16.mxu0 %v2485_v38  ;;  %2231 = vmatprep.subr.bf16.mxu1 %v2855_v0  ;;  %v1581_v38 = vrot.slane %v763_v28, %v3343_v63 }
 0x23e   : > { %1484 = vmatpush1.bf16.msra.mxu0 %v2483_v46  ;;  %2232 = vmatpush3.bf16.msra.mxu1 %v2486_v47 }
 0x23f   : > { %1713 = vmatprep.subr.bf16.mxu0 %v2489_v49  ;;  %2237 = vmatprep.subr.bf16.mxu1 %v2855_v0 }
 0x241   : > { %1502 = vmatmul.mubr.bf16.vlgmr.msra.gmra.mrb[4].mxu0 %v1130_v52  ;;  %2234 = vmatmul.mubr.bf16.vlgmr.msra.gmra.mrb[8].mxu1 %v1130_v52 }
 0x242   : > { %1714 = vmatpush1.bf16.msra.mxu0 %v2487_v50  ;;  %2238 = vmatpush3.bf16.msra.mxu1 %v2508_v51 }
 0x243   : > { %1715 = vmatprep.subr.bf16.mxu0 %v2492_v53  ;;  %2239 = vmatprep.subr.bf16.mxu1 %v2855_v0 }
 0x244   : > { %1745 = vmatprep.mubr.bf16.mxu0 %v2858_v2  ;;  %2253 = vmatprep.mubr.msk.bf16.mxu1 %vm2856_vm0, %v2855_v0  ;;  %v2499_v2 = vld [vmem:[#allocation14 + $0x60] ss:$12 sps:$4 sm:$0xff]  }
 0x246   : > { %1716 = vmatpush1.bf16.msra.mxu0 %v2490_v54  ;;  %2240 = vmatpush3.bf16.msra.mxu1 %v2512_v55 }
 0x247   : > { %1717 = vmatprep.subr.bf16.mxu0 %v2495_v56  ;;  %2241 = vmatprep.subr.bf16.mxu1 %v2855_v0 }
 0x24a   : > { %1718 = vmatpush1.bf16.msra.mxu0 %v2493_v58  ;;  %2242 = vmatpush3.bf16.msra.mxu1 %v2513_v59 }
 0x24b   : > { %1719 = vmatprep.subr.bf16.mxu0 %v2498_v60  ;;  %2243 = vmatprep.subr.bf16.mxu1 %v2855_v0 }
 0x24e   : > { %1720 = vmatpush1.bf16.msra.mxu0 %v2496_v1  ;;  %2244 = vmatpush3.bf16.msra.mxu1 %v2514_v3 }
 0x24f   : > { %1721 = vmatprep.subr.bf16.mxu0 %v2501_v4  ;;  %2245 = vmatprep.subr.bf16.mxu1 %v2855_v0 }
 0x252   : > { %1722 = vmatpush1.bf16.msra.mxu0 %v2499_v2  ;;  %2246 = vmatpush3.bf16.msra.mxu1 %v2515_v6 }
 0x253   : > { %1723 = vmatprep.subr.bf16.mxu0 %v2504_v7  ;;  %2247 = vmatprep.subr.bf16.mxu1 %v2855_v0 }
 0x256   : > { %1724 = vmatpush1.bf16.msra.mxu0 %v2502_v8  ;;  %2248 = vmatpush3.bf16.msra.mxu1 %v2516_v9 }
 0x257   : > { %1725 = vmatprep.subr.bf16.mxu0 %v2507_v10  ;;  %2249 = vmatprep.subr.bf16.mxu1 %v2855_v0 }
 0x25a   : > { %1726 = vmatpush1.bf16.msra.mxu0 %v2505_v12  ;;  %2250 = vmatpush3.bf16.msra.mxu1 %v2517_v13 }
 0x25b   : > { %1727 = vmatprep.subr.bf16.mxu0 %v2511_v14  ;;  %2251 = vmatprep.subr.bf16.mxu1 %v2855_v0  ;;  %v730_v0 = vld [vmem:[%s3568_s20] sm:$0x7] }
 0x25c   : > { %v1554_v29 = vrot.slane %v730_v0, %v3337_v61  ;;  %v1558_v34 = vrot.slane %v730_v0, %v3340_v62  ;;  %v1562_v62 = vrot.slane %v730_v0, %v3343_v63 }
 0x25e   : > { %1728 = vmatpush1.bf16.msra.mxu0 %v2509_v15  ;;  %2252 = vmatpush3.bf16.msra.mxu1 %v2518_v5  ;;  %v2259_v43 = vadd.f32 %v1577_v35, %v1558_v34 }
 0x261   : > { %1746 = vmatmul.mubr.bf16.vlgmr.msra.gmra.mrb[4].mxu0 %v3310_v24  ;;  %2254 = vmatmul.mubr.bf16.vlgmr.msra.gmra.mrb[12].mxu1 %v3310_v24  ;;  %v1573_v24 = vrot.slane %v763_v28, %v3337_v61 }
 0x263   : > { %v2257_v31 = vadd.f32 %v1573_v24, %v1554_v29 }
 0x2f4   : > { %v1335_v16 = vpop.f32.mrb[4].mxu1 }
 0x2f5   : > { %v2215_v18 = vpop.f32.mrb[5].mxu1 }
 0x2f6   : > { %v1338_v19 = vpop.f32.mrb[6].mxu1 }
 0x2f7   : > { %v2216_v11 = vpop.f32.mrb[7].mxu1 }
 0x314   : > { %v1544_v22 = vpop.f32.mrb[8].mxu1 }
 0x315   : > { %v1545_v23 = vadd.f32 %v1544_v22, %v1335_v16  ;;  %v2235_v25 = vpop.f32.mrb[9].mxu1 }
 0x316   : > { %v1547_v26 = vpop.f32.mrb[10].mxu1 }
 0x317   : > { %v2236_v27 = vpop.f32.mrb[11].mxu1  ;;  %v1568_v48 = vadd.f32 %v1562_v62, %v1545_v23 }
 0x334   : > { %v1747_v32 = vpop.f32.mrb[4].mxu0  ;;  %v1788_v17 = vpop.f32.mrb[12].mxu1 }
 0x335   : > { %v2258_v33 = vadd.f32 %v2257_v31, %v1747_v32  ;;  %v1749_v36 = vpop.f32.mrb[5].mxu0  ;;  %v2255_v37 = vpop.f32.mrb[13].mxu1  ;;  %v1789_v45 = vadd.f32 %v1788_v17, %v1581_v38 }
 0x336   : > { %v1751_v21 = vpop.f32.mrb[6].mxu0  ;;  %v1791_v39 = vpop.f32.mrb[14].mxu1  ;;  %v2260_v57 = vadd.f32 %v2259_v43, %v1749_v36 }
 0x337   : > { %v2106_v40 = vmul.f32 -1.442695, %v2258_v33  ;;  %v1752_v41 = vpop.f32.mrb[7].mxu0  ;;  %v2256_v42 = vpop.f32.mrb[15].mxu1 }
 0x338   : > { %v2107_v44 = vmul.f32 -1.442695, %v2260_v57 }
 0x339   : > { %2519 = vpow2.f32 %v2106_v40 }
 0x33a   : > { %2521 = vpow2.f32 %v2107_v44 }
 0x343   : > { %v2520_v61 = vpop.eup %2519 }
 0x344   : > { %v1798_v30 = vadd.f32 1.0, %v2520_v61  ;;  %v2522_v46 = vpop.eup %2521 }
 0x345   : > { %v1805_v50 = vadd.f32 1.0, %v2522_v46 }
 0x346   : > { %2523 = vrcp.f32 %v1798_v30 }
 0x350   : > { %v2524_v47 = vpop.eup %2523 }
 0x351   : > { %v1808_v49 = vmul.f32 %v2524_v47, %v1789_v45 }
 0x353   : > { %v1809_v51 = vadd.f32 %v1808_v49, %v1568_v48 }
 0x355   : > { %2525 = vtanh.f32 %v1809_v51 }
 0x356   : > { %2527 = vrcp.f32 %v1805_v50 }
 0x35f   : > { %v2526_v52 = vpop.eup %2525 }
 0x360   : > { %v1811_v53 = vsub.f32 %v3303_v20, %v2526_v52  ;;  %v2528_v54 = vpop.eup %2527 }
 0x362   : > { %v1812_v55 = vmul.f32 %v2528_v54, %v1811_v53 }
 0x364   : > { %v1813_v63 = vadd.f32 %v2526_v52, %v1812_v55 }
 0x366   : > { %1814 = vst [vmem:[%s626_s24] sm:$0xff] %v1813_v63 }
 0x367   : > { %2772 = shalt.err (!%p2769_p1)
}
 0x368   : > { %s2773_s25 = scalar_lea.hbm %s3428_s3, 128  ;;  %s2777_s29 = scalar_lea.hbm %s3570_s23, 256 }
 0x369   : > { %p2774_p13 = scmp.ne.s32.totalorder %s3428_s3, %s2773_s25  ;;  %p2778_p7 = scmp.lt.u32.totalorder %s3428_s3, %s3570_s23 }
 0x36a   : > { %p2779_p9 = scmp.lt.u32.totalorder %s2777_s29, %s2773_s25  ;;  %p2781_p11 = scmp.lt.u32.totalorder %s2773_s25, %s3428_s3 }
 0x36b   : > { %p2775_p12 = pnand %p2774_p13, %p3571_p6 }
 0x36c   : > { %p2780_p3 = por %p2779_p9, %p2778_p7 }
 0x36d   : > { %p2776_p0 = pneg %p2775_p12 }
 0x36e   : > { %p2782_p8 = por %p2781_p11, %p2780_p3 }
 0x370   : > { %p2783_p5 = pnand %p2782_p8, %p2776_p0 }
 0x372   : > { %2786 = shalt.err (!%p2783_p5)
}
 0x373   : > { %2295 = dma.vmem_to_hbm [thread:$0]  (%p3571_p6), %s3430_s18, 128, %s3428_s3, %s1816_s16  }
 0x374 PF: > { %s3572_s1 = sld [smem:[#allocation23_spill]]  ;;  %s3573_s26 = sld [smem:[#allocation29_spill]] }
 0x375   : > { %s3574_s9 = sld [smem:[#allocation24_spill]] }
 0x37a   : > { %s1841_s21 = sand.u32 1, %s3572_s1   ;;  %p3575_p2 = scmp.ne.s32.totalorder %s3573_s26, 0 }
 0x37b   : > { %p3576_p4 = scmp.ge.s32.totalorder %s3574_s9, 2  ;;  %s1842_s20 = scalar_lea.sflag [#allocation4], %s1841_s21 }
 0x37d   : > { %p2324_p10 = pnand %p3576_p4, %p3575_p2 }
 0x37f   : > { %2824 = dma.done.wait (!%p2324_p10), %s1842_s20, 128  }
 0x380   : > { %2826 = vsyncadd (!%p2324_p10), %s1842_s20, 4294967168  ;;  %s3577_s16 = sld [smem:[#allocation26_spill]]  ;;  %s3578_s13 = sld [smem:[#allocation27_spill]] }
 0x381   : > { %s3579_s29 = smov %s2833_s30  ;;  %s3580_s30 = smov %s2837_s15 }
 0x386   : > { %p33_p1 = scmp.ge.s32.totalorder %s3577_s16, 4   ;;  %s3581_s15 = smov %s3578_s13 }
 0x388   :  { %35 = sbr.rel (!%p33_p1) target bundleno = 21 (0x15), region = 165 }
 0x38f   :  { %1847 = vsyncpa [#allocation3], 1 }
 0x390   :  { %1849 = vsyncpa [#allocation3 + $0x1], 1 }
 0x391   :  { %1850 = vsyncpa [#allocation6], 1 }
 0x392   :  { %1852 = vsyncpa [#allocation6 + $0x1], 1 }
 0x393   :  { %1853 = vsyncpa [#allocation9], 1 }
 0x394   :  { %1854 = vsyncpa [#allocation12], 1 }
 0x395   :  { %1855 = vsyncpa [#allocation15], 1 }
 0x396   :  { %1856 = vsyncpa [#allocation4], 1 }
 0x397   :  { %1858 = vsyncpa [#allocation4 + $0x1], 1 }

</bundles_post_ra>
